<compile_context>
chip_gen: v5e
topology: v5e:2x2
jax: 0.10.0
libtpu: 0.0.40
codegen_flags: <defaults>
</compile_context>

<pallas_src>
import functools

import jax
import jax.numpy as jnp
from jax.experimental import pallas as pl
from jax.experimental.pallas import tpu as pltpu


# ----------------------------------------------------------------------------
# Stage 1: h = relu(x @ [m*W1s | m*W1t] + [b1s | b1t])      (K-tiled over D)
# (mask already folded into the fused weight in the wrapper)
# ----------------------------------------------------------------------------
def _hidden_kernel(x_ref, w1_ref, b1_ref, h_ref, acc_ref):
    k = pl.program_id(1)

    @pl.when(k == 0)
    def _init():
        acc_ref[...] = jnp.zeros_like(acc_ref)

    acc_ref[...] += jnp.dot(x_ref[...].astype(jnp.bfloat16), w1_ref[...],
                            preferred_element_type=jnp.float32)

    @pl.when(k == pl.num_programs(1) - 1)
    def _finalize():
        h_ref[...] = jnp.maximum(acc_ref[...] + b1_ref[...], 0.0).astype(jnp.bfloat16)


# ----------------------------------------------------------------------------
# Stage 2: per output D-chunk j:
#   s_j = tanh(h_s @ W2s[:, j] + b2s_j),  t_j = h_t @ W2t[:, j] + b2t_j
#   y_j = x_j*m_j + x_j*(1-m_j)*exp(s_j) + t_j
#   logdet += sum_j s_j * (1 - m_j)     (lane-dense accumulator + output)
# ----------------------------------------------------------------------------
def _output_kernel(x_ref, mask_ref, h_ref, w2s_ref, b2s_ref, w2t_ref, b2t_ref,
                   y_ref, ld_ref, ld_acc_ref):
    j = pl.program_id(1)

    @pl.when(j == 0)
    def _init():
        ld_acc_ref[...] = jnp.zeros_like(ld_acc_ref)

    x = x_ref[...]                                   # f32 (tb, td)
    m = mask_ref[...]                                # f32 (1, td)
    one_minus_m = 1.0 - m

    half = h_ref.shape[-1] // 2                      # 128-aligned ref views
    s = jnp.tanh(jnp.dot(h_ref[:, :half], w2s_ref[...],
                         preferred_element_type=jnp.float32) + b2s_ref[...])
    t = jnp.dot(h_ref[:, half:], w2t_ref[...],
                preferred_element_type=jnp.float32) + b2t_ref[...]

    y_ref[...] = x * m + (x * one_minus_m) * jnp.exp(s) + t

    # Fold tile_d lanes down to a lane-dense (tb, 128) partial per step.
    prod = s * one_minus_m
    partial = prod[:, 0:128]
    for c in range(1, prod.shape[-1] // 128):
        partial = partial + prod[:, c * 128:(c + 1) * 128]
    ld_acc_ref[...] += partial

    @pl.when(j == pl.num_programs(1) - 1)
    def _finalize():
        ld_ref[...] = jnp.broadcast_to(
            jnp.sum(ld_acc_ref[...], axis=1, keepdims=True), ld_ref.shape)


# ----------------------------------------------------------------------------
# Wrapper helpers
# ----------------------------------------------------------------------------
def _pad_to(a, axis, multiple):
    size = a.shape[axis]
    pad = (-size) % multiple
    if pad == 0:
        return a
    widths = [(0, 0)] * a.ndim
    widths[axis] = (0, pad)
    return jnp.pad(a, widths)


def _choose_tile_b(batch, tile_b):
    """Cap tile_b for small batches so the 'parallel' batch axis keeps >=2
    tiles (v7x has 2 TensorCores); keep a multiple of 16 (bf16 sublane tile)."""
    if batch <= tile_b:
        tile_b = ((batch + 1) // 2 + 15) // 16 * 16 if batch > 16 else 16
    return tile_b


def pack_realnvp_params(params, mask, *, tile_d=512):
    """One-time weight packing (hoist out of the per-call forward path).

    Weights are [in_features, out_features] (y = x @ W + b).  The mask MUST be
    binary {0,1}: it is folded into the first-layer weights (exact for 0/1)."""
    f32, bf16 = jnp.float32, jnp.bfloat16
    D, H = params["w1s"].shape
    m = jnp.asarray(mask, f32).reshape(D)

    # Fold mask into W1: (x*m) @ W1 == x @ (m[:, None] * W1) for binary m.
    w1s = m[:, None] * params["w1s"].astype(f32)
    w1t = m[:, None] * params["w1t"].astype(f32)
    w1s = _pad_to(_pad_to(w1s, 0, tile_d), 1, 128)
    w1t = _pad_to(_pad_to(w1t, 0, tile_d), 1, 128)
    w1_cat = jnp.concatenate([w1s, w1t], axis=1).astype(bf16)          # (Dp, 2Hp)

    b1s = _pad_to(params["b1s"].astype(f32).reshape(1, H), 1, 128)
    b1t = _pad_to(params["b1t"].astype(f32).reshape(1, H), 1, 128)
    b1_cat = jnp.concatenate([b1s, b1t], axis=1)                       # (1, 2Hp)

    w2s = _pad_to(_pad_to(params["w2s"].astype(f32), 0, 128), 1, tile_d).astype(bf16)
    w2t = _pad_to(_pad_to(params["w2t"].astype(f32), 0, 128), 1, tile_d).astype(bf16)
    b2s = _pad_to(params["b2s"].astype(f32).reshape(1, D), 1, tile_d)
    b2t = _pad_to(params["b2t"].astype(f32).reshape(1, D), 1, tile_d)
    mask_p = _pad_to(m.reshape(1, D), 1, tile_d)

    return dict(w1_cat=w1_cat, b1_cat=b1_cat, w2s=w2s, w2t=w2t,
                b2s=b2s, b2t=b2t, mask=mask_p)


@functools.partial(jax.jit, static_argnames=("tile_b", "tile_d"))
def _realnvp_forward_padded(x_p, mask_p, w1_cat, b1_cat, w2s_p, b2s_p,
                            w2t_p, b2t_p, *, tile_b, tile_d):
    f32, bf16 = jnp.float32, jnp.bfloat16
    Bp, Dp = x_p.shape
    two_hp = w1_cat.shape[1]
    hp = two_hp // 2
    grid = (Bp // tile_b, Dp // tile_d)

    # ~6-18 MiB footprint at the default tiles; 40 MiB limit leaves headroom on
    # v7x (64 MiB physical) and is far below v5e/v6e's 128 MiB.
    cparams = pltpu.CompilerParams(
        dimension_semantics=("parallel", "arbitrary"),
        vmem_limit_bytes=40 * 1024 * 1024)

    # ---- Stage 1: fused scale|translation first layer ----
    h = pl.pallas_call(
        _hidden_kernel,
        out_shape=jax.ShapeDtypeStruct((Bp, two_hp), bf16),
        grid_spec=pltpu.PrefetchScalarGridSpec(
            num_scalar_prefetch=0,
            grid=grid,
            in_specs=[
                pl.BlockSpec((tile_b, tile_d), lambda i, k: (i, k)),   # x
                pl.BlockSpec((tile_d, two_hp), lambda i, k: (k, 0)),   # [m*W1s|m*W1t]
                pl.BlockSpec((1, two_hp), lambda i, k: (0, 0)),        # [b1s|b1t]
            ],
            out_specs=pl.BlockSpec((tile_b, two_hp), lambda i, k: (i, 0)),
            scratch_shapes=[pltpu.VMEM((tile_b, two_hp), f32)],
        ),
        compiler_params=cparams,
    )(x_p, w1_cat, b1_cat)

    # ---- Stage 2: outputs + logdet ----
    y_p, ld_p = pl.pallas_call(
        _output_kernel,
        out_shape=(
            jax.ShapeDtypeStruct((Bp, Dp), f32),
            jax.ShapeDtypeStruct((Bp, 128), f32),
        ),
        grid_spec=pltpu.PrefetchScalarGridSpec(
            num_scalar_prefetch=0,
            grid=grid,
            in_specs=[
                pl.BlockSpec((tile_b, tile_d), lambda i, j: (i, j)),   # x
                pl.BlockSpec((1, tile_d), lambda i, j: (0, j)),        # mask
                pl.BlockSpec((tile_b, two_hp), lambda i, j: (i, 0)),   # h
                pl.BlockSpec((hp, tile_d), lambda i, j: (0, j)),       # W2s
                pl.BlockSpec((1, tile_d), lambda i, j: (0, j)),        # b2s
                pl.BlockSpec((hp, tile_d), lambda i, j: (0, j)),       # W2t
                pl.BlockSpec((1, tile_d), lambda i, j: (0, j)),        # b2t
            ],
            out_specs=[
                pl.BlockSpec((tile_b, tile_d), lambda i, j: (i, j)),
                pl.BlockSpec((tile_b, 128), lambda i, j: (i, 0)),
            ],
            scratch_shapes=[pltpu.VMEM((tile_b, 128), f32)],
        ),
        compiler_params=cparams,
    )(x_p, mask_p, h, w2s_p, b2s_p, w2t_p, b2t_p)

    return y_p, ld_p


def realnvp_coupling_forward(x, mask, params=None, *, packed=None,
                             tile_b=256, tile_d=512, reverse=False):
    """x: [B, D] f32, mask: binary {0,1} of size D, params: dict of weights
    ([in, out] layout) / biases.  Returns (y [B, D] f32, logdet [B] f32)."""
    if reverse:
        # TODO(synk): reverse=True (inverse transform) path not implemented.
        raise NotImplementedError("reverse=True path is not implemented")
    assert tile_b % 16 == 0 and tile_d % 128 == 0  # bf16 sublane tile is 16

    B, D = x.shape
    if packed is None:
        packed = pack_realnvp_params(params, mask, tile_d=tile_d)
    Dp = packed["mask"].shape[1]
    assert Dp % tile_d == 0, "packed params built with a different tile_d"

    tile_b = _choose_tile_b(B, tile_b)
    x_p = _pad_to(_pad_to(x.astype(jnp.float32), 0, tile_b), 1, Dp)
    # (padded batch rows / feature cols / hidden units contribute exactly 0 to
    # y and logdet and are sliced off below)

    y_p, ld_p = _realnvp_forward_padded(
        x_p, packed["mask"], packed["w1_cat"], packed["b1_cat"],
        packed["w2s"], packed["b2s"], packed["w2t"], packed["b2t"],
        tile_b=tile_b, tile_d=tile_d)
    return y_p[:B, :D], ld_p[:B, 0]


# ----------------------------------------------------------------------------
# Reference / test
# ----------------------------------------------------------------------------
def _init_linear(key, fan_in, fan_out):
    """PyTorch-style uniform(-1/sqrt(fan_in), 1/sqrt(fan_in)) init."""
    kw, kb = jax.random.split(key)
    bound = 1.0 / jnp.sqrt(jnp.float32(fan_in))
    w = jax.random.uniform(kw, (fan_in, fan_out), jnp.float32, -bound, bound)
    b = jax.random.uniform(kb, (1, fan_out), jnp.float32, -bound, bound)
    return w, b


def _reference_forward(x, mask, p):
    """Pure-JAX reference matching the kernel's bf16-matmul / f32-accumulate."""
    bf16 = jnp.bfloat16

    def mm(a, w):
        return jnp.dot(a.astype(bf16), w.astype(bf16),
                       preferred_element_type=jnp.float32)

    m = mask.reshape(1, -1)
    x_act = x * m
    x_pas = x * (1.0 - m)
    h_s = jnp.maximum(mm(x_act, p["w1s"]) + p["b1s"], 0.0)
    h_t = jnp.maximum(mm(x_act, p["w1t"]) + p["b1t"], 0.0)
    s = jnp.tanh(mm(h_s, p["w2s"]) + p["b2s"])
    t = mm(h_t, p["w2t"]) + p["b2t"]
    y = x_act + x_pas * jnp.exp(s) + t
    ld = jnp.sum(s * (1.0 - m), axis=1)
    return y, ld


if __name__ == "__main__":
    # Small shapes consistent with the module (production: D=17612, H=512).
    # Deliberately non-multiples of the tiles to exercise the padding path.
    B, D, H = 160, 300, 96

    key = jax.random.PRNGKey(0)
    kx, k1, k2, k3, k4 = jax.random.split(key, 5)

    x = jax.random.normal(kx, (B, D), jnp.float32)
    # standard RealNVP alternating binary mask
    mask = (jnp.arange(D) % 2).astype(jnp.float32).reshape(1, D)
    assert bool(jnp.all((mask == 0.0) | (mask == 1.0)))  # mask must be binary

    w1s, b1s = _init_linear(k1, D, H)
    w2s, b2s = _init_linear(k2, H, D)
    w1t, b1t = _init_linear(k3, D, H)
    w2t, b2t = _init_linear(k4, H, D)
    params = dict(w1s=w1s, b1s=b1s, w2s=w2s, b2s=b2s,
                  w1t=w1t, b1t=b1t, w2t=w2t, b2t=b2t)

    y_ref, ld_ref = _reference_forward(x, mask, params)

    # 1) Small tiles: exercise multi-step grids on both axes + padding paths.
    y1, ld1 = realnvp_coupling_forward(x, mask, params, tile_b=64, tile_d=128)
    y1 = jax.block_until_ready(y1)
    ld1 = jax.block_until_ready(ld1)
    assert y1.shape == (B, D) and ld1.shape == (B,)
    assert jnp.allclose(y1, y_ref, atol=1e-2, rtol=1e-2), \
        float(jnp.max(jnp.abs(y1 - y_ref)))
    assert jnp.allclose(ld1, ld_ref, atol=1e-2, rtol=1e-2), \
        float(jnp.max(jnp.abs(ld1 - ld_ref)))

    # 2) Default (production-oriented) tiles with packing hoisted out of the
    #    forward call (packed weights built once and reused).
    packed = pack_realnvp_params(params, mask, tile_d=512)
    y2, ld2 = realnvp_coupling_forward(x, mask, params=None, packed=packed,
                                       tile_b=256, tile_d=512)
    y2 = jax.block_until_ready(y2)
    ld2 = jax.block_until_ready(ld2)
    assert y2.shape == (B, D) and ld2.shape == (B,)
    assert jnp.allclose(y2, y_ref, atol=1e-2, rtol=1e-2), \
        float(jnp.max(jnp.abs(y2 - y_ref)))
    assert jnp.allclose(ld2, ld_ref, atol=1e-2, rtol=1e-2), \
        float(jnp.max(jnp.abs(ld2 - ld_ref)))

    print("KERNEL_OK")
</pallas_src>

<mosaic_0001>
module attributes {stable_mosaic.version = 11 : i64} {
  func.func @_output_kernel(%arg0: i32, %arg1: i32, %arg2: memref<64x128xf32, #tpu.memory_space<vmem>>, %arg3: memref<1x128xf32, #tpu.memory_space<vmem>>, %arg4: memref<64x256xbf16, #tpu.memory_space<vmem>>, %arg5: memref<128x128xbf16, #tpu.memory_space<vmem>>, %arg6: memref<1x128xf32, #tpu.memory_space<vmem>>, %arg7: memref<128x128xbf16, #tpu.memory_space<vmem>>, %arg8: memref<1x128xf32, #tpu.memory_space<vmem>>, %arg9: memref<64x128xf32, #tpu.memory_space<vmem>>, %arg10: memref<64x128xf32, #tpu.memory_space<vmem>>, %arg11: memref<64x128xf32, #tpu.memory_space<vmem>>) attributes {dimension_semantics = [#tpu.dimension_semantics<parallel>, #tpu.dimension_semantics<arbitrary>], iteration_bounds = array<i64: 3, 3>, scalar_prefetch = 0 : i64, scratch_operands = 1 : i64, tpu.core_type = #tpu.core_type<tc>, window_params = [{transform_indices = @transform_0, window_bounds = array<i64: 64, 128>}, {transform_indices = @transform_1, window_bounds = array<i64: 1, 128>}, {transform_indices = @transform_2, window_bounds = array<i64: 64, 256>}, {transform_indices = @transform_3, window_bounds = array<i64: 128, 128>}, {transform_indices = @transform_4, window_bounds = array<i64: 1, 128>}, {transform_indices = @transform_5, window_bounds = array<i64: 128, 128>}, {transform_indices = @transform_6, window_bounds = array<i64: 1, 128>}, {transform_indices = @transform_7, window_bounds = array<i64: 64, 128>}, {transform_indices = @transform_8, window_bounds = array<i64: 64, 128>}]} {
    %c0_i32 = arith.constant 0 : i32
    %0 = arith.cmpi eq, %arg1, %c0_i32 : i32
    %1 = arith.extui %0 : i1 to i32
    %c0_i32_0 = arith.constant 0 : i32
    %2 = arith.cmpi ne, %1, %c0_i32_0 : i32
    scf.if %2 {
      %cst_24 = arith.constant 0.000000e+00 : f32
      %37 = vector.broadcast %cst_24 : f32 to vector<64x128xf32>
      %c0_25 = arith.constant 0 : index
      %c0_26 = arith.constant 0 : index
      %38 = vector.load %arg11[%c0_25, %c0_26] : memref<64x128xf32, #tpu.memory_space<vmem>>, vector<64x128xf32>
      tpu.vector_store %arg11[%c0_25, %c0_26], %37 {strides = array<i32>} : memref<64x128xf32, #tpu.memory_space<vmem>>, vector<64x128xf32>,
    } else {
    }
    %c0 = arith.constant 0 : index
    %c0_1 = arith.constant 0 : index
    %3 = vector.load %arg2[%c0, %c0_1] : memref<64x128xf32, #tpu.memory_space<vmem>>, vector<64x128xf32>
    %c0_2 = arith.constant 0 : index
    %c0_3 = arith.constant 0 : index
    %4 = vector.load %arg3[%c0_2, %c0_3] : memref<1x128xf32, #tpu.memory_space<vmem>>, vector<1x128xf32>
    %cst = arith.constant 1.000000e+00 : f32
    %5 = vector.broadcast %cst : f32 to vector<1x128xf32>
    %6 = arith.subf %5, %4 : vector<1x128xf32>
    %c0_4 = arith.constant 0 : index
    %c0_5 = arith.constant 0 : index
    %7 = vector.load %arg4[%c0_4, %c0_5] : memref<64x256xbf16, #tpu.memory_space<vmem>>, vector<64x128xbf16>
    %c0_6 = arith.constant 0 : index
    %c0_7 = arith.constant 0 : index
    %8 = vector.load %arg5[%c0_6, %c0_7] : memref<128x128xbf16, #tpu.memory_space<vmem>>, vector<128x128xbf16>
    %cst_8 = arith.constant dense<0.000000e+00> : vector<64x128xf32>
    %9 = tpu.matmul %7, %8, %cst_8 {dimension_numbers = #tpu.dot_dimension_numbers<[1], [0], [0], [1], [0, 0, 1, 1], [], []>} : vector<64x128xbf16>, vector<128x128xbf16>, vector<64x128xf32> -> vector<64x128xf32>
    %c0_9 = arith.constant 0 : index
    %c0_10 = arith.constant 0 : index
    %10 = vector.load %arg6[%c0_9, %c0_10] : memref<1x128xf32, #tpu.memory_space<vmem>>, vector<1x128xf32>
    %11 = vector.broadcast %10 : vector<1x128xf32> to vector<64x128xf32>
    %12 = arith.addf %9, %11 : vector<64x128xf32>
    %13 = math.tanh %12 : vector<64x128xf32>
    %c0_11 = arith.constant 0 : index
    %c128 = arith.constant 128 : index
    %14 = vector.load %arg4[%c0_11, %c128] : memref<64x256xbf16, #tpu.memory_space<vmem>>, vector<64x128xbf16>
    %c0_12 = arith.constant 0 : index
    %c0_13 = arith.constant 0 : index
    %15 = vector.load %arg7[%c0_12, %c0_13] : memref<128x128xbf16, #tpu.memory_space<vmem>>, vector<128x128xbf16>
    %cst_14 = arith.constant dense<0.000000e+00> : vector<64x128xf32>
    %16 = tpu.matmul %14, %15, %cst_14 {dimension_numbers = #tpu.dot_dimension_numbers<[1], [0], [0], [1], [0, 0, 1, 1], [], []>} : vector<64x128xbf16>, vector<128x128xbf16>, vector<64x128xf32> -> vector<64x128xf32>
    %c0_15 = arith.constant 0 : index
    %c0_16 = arith.constant 0 : index
    %17 = vector.load %arg8[%c0_15, %c0_16] : memref<1x128xf32, #tpu.memory_space<vmem>>, vector<1x128xf32>
    %18 = vector.broadcast %17 : vector<1x128xf32> to vector<64x128xf32>
    %19 = arith.addf %16, %18 : vector<64x128xf32>
    %20 = vector.broadcast %4 : vector<1x128xf32> to vector<64x128xf32>
    %21 = arith.mulf %3, %20 : vector<64x128xf32>
    %22 = vector.broadcast %6 : vector<1x128xf32> to vector<64x128xf32>
    %23 = arith.mulf %3, %22 : vector<64x128xf32>
    %24 = math.exp %13 : vector<64x128xf32>
    %25 = arith.mulf %23, %24 : vector<64x128xf32>
    %26 = arith.addf %21, %25 : vector<64x128xf32>
    %27 = arith.addf %26, %19 : vector<64x128xf32>
    %c0_17 = arith.constant 0 : index
    %c0_18 = arith.constant 0 : index
    %28 = vector.load %arg9[%c0_17, %c0_18] : memref<64x128xf32, #tpu.memory_space<vmem>>, vector<64x128xf32>
    tpu.vector_store %arg9[%c0_17, %c0_18], %27 {strides = array<i32>} : memref<64x128xf32, #tpu.memory_space<vmem>>, vector<64x128xf32>,
    %29 = vector.broadcast %6 : vector<1x128xf32> to vector<64x128xf32>
    %30 = arith.mulf %13, %29 : vector<64x128xf32>
    %c0_19 = arith.constant 0 : index
    %c0_20 = arith.constant 0 : index
    %31 = vector.load %arg11[%c0_19, %c0_20] : memref<64x128xf32, #tpu.memory_space<vmem>>, vector<64x128xf32>
    %32 = arith.addf %31, %30 : vector<64x128xf32>
    %c0_21 = arith.constant 0 : index
    %c0_22 = arith.constant 0 : index
    %33 = vector.load %arg11[%c0_21, %c0_22] : memref<64x128xf32, #tpu.memory_space<vmem>>, vector<64x128xf32>
    tpu.vector_store %arg11[%c0_21, %c0_22], %32 {strides = array<i32>} : memref<64x128xf32, #tpu.memory_space<vmem>>, vector<64x128xf32>,
    %c2_i32 = arith.constant 2 : i32
    %34 = arith.cmpi eq, %arg1, %c2_i32 : i32
    %35 = arith.extui %34 : i1 to i32
    %c0_i32_23 = arith.constant 0 : i32
    %36 = arith.cmpi ne, %35, %c0_i32_23 : i32
    scf.if %36 {
      %c0_24 = arith.constant 0 : index
      %c0_25 = arith.constant 0 : index
      %37 = vector.load %arg11[%c0_24, %c0_25] : memref<64x128xf32, #tpu.memory_space<vmem>>, vector<64x128xf32>
      %cst_26 = arith.constant dense<0.000000e+00> : vector<64xf32>
      %38 = vector.multi_reduction <add>, %37, %cst_26 [1] : vector<64x128xf32> to vector<64xf32>
      %39 = vector.shape_cast %38 : vector<64xf32> to vector<64x1xf32>
      %40 = vector.shape_cast %39 : vector<64x1xf32> to vector<64x1xf32>
      %41 = vector.broadcast %40 : vector<64x1xf32> to vector<64x128xf32>
      %c0_27 = arith.constant 0 : index
      %c0_28 = arith.constant 0 : index
      %42 = vector.load %arg10[%c0_27, %c0_28] : memref<64x128xf32, #tpu.memory_space<vmem>>, vector<64x128xf32>
      tpu.vector_store %arg10[%c0_27, %c0_28], %41 {strides = array<i32>} : memref<64x128xf32, #tpu.memory_space<vmem>>, vector<64x128xf32>,
    } else {
    }
    return
  }
  func.func @transform_0(%arg0: i32, %arg1: i32) -> (i32, i32) {
    %c0_i32 = arith.constant 0 : i32
    return %arg0, %arg1 : i32, i32
  }
  func.func @transform_1(%arg0: i32, %arg1: i32) -> (i32, i32) {
    %c0_i32 = arith.constant 0 : i32
    %c0_i32_0 = arith.constant 0 : i32
    return %c0_i32, %arg1 : i32, i32
  }
  func.func @transform_2(%arg0: i32, %arg1: i32) -> (i32, i32) {
    %c0_i32 = arith.constant 0 : i32
    %c0_i32_0 = arith.constant 0 : i32
    return %arg0, %c0_i32 : i32, i32
  }
  func.func @transform_3(%arg0: i32, %arg1: i32) -> (i32, i32) {
    %c0_i32 = arith.constant 0 : i32
    %c0_i32_0 = arith.constant 0 : i32
    return %c0_i32, %arg1 : i32, i32
  }
  func.func @transform_4(%arg0: i32, %arg1: i32) -> (i32, i32) {
    %c0_i32 = arith.constant 0 : i32
    %c0_i32_0 = arith.constant 0 : i32
    return %c0_i32, %arg1 : i32, i32
  }
  func.func @transform_5(%arg0: i32, %arg1: i32) -> (i32, i32) {
    %c0_i32 = arith.constant 0 : i32
    %c0_i32_0 = arith.constant 0 : i32
    return %c0_i32, %arg1 : i32, i32
  }
  func.func @transform_6(%arg0: i32, %arg1: i32) -> (i32, i32) {
    %c0_i32 = arith.constant 0 : i32
    %c0_i32_0 = arith.constant 0 : i32
    return %c0_i32, %arg1 : i32, i32
  }
  func.func @transform_7(%arg0: i32, %arg1: i32) -> (i32, i32) {
    %c0_i32 = arith.constant 0 : i32
    return %arg0, %arg1 : i32, i32
  }
  func.func @transform_8(%arg0: i32, %arg1: i32) -> (i32, i32) {
    %c0_i32 = arith.constant 0 : i32
    %c0_i32_0 = arith.constant 0 : i32
    return %arg0, %c0_i32 : i32, i32
  }
}

module attributes {stable_mosaic.version = 11 : i64} {
  func.func @_hidden_kernel(%arg0: i32, %arg1: i32, %arg2: memref<64x128xf32, #tpu.memory_space<vmem>>, %arg3: memref<128x256xbf16, #tpu.memory_space<vmem>>, %arg4: memref<1x256xf32, #tpu.memory_space<vmem>>, %arg5: memref<64x256xbf16, #tpu.memory_space<vmem>>, %arg6: memref<64x256xf32, #tpu.memory_space<vmem>>) attributes {dimension_semantics = [#tpu.dimension_semantics<parallel>, #tpu.dimension_semantics<arbitrary>], iteration_bounds = array<i64: 3, 3>, scalar_prefetch = 0 : i64, scratch_operands = 1 : i64, tpu.core_type = #tpu.core_type<tc>, window_params = [{transform_indices = @transform_0, window_bounds = array<i64: 64, 128>}, {transform_indices = @transform_1, window_bounds = array<i64: 128, 256>}, {pipeline_mode = #tpu.pipeline_mode<synchronous>, transform_indices = @transform_2, window_bounds = array<i64: 1, 256>}, {transform_indices = @transform_3, window_bounds = array<i64: 64, 256>}]} {
    %c0_i32 = arith.constant 0 : i32
    %0 = arith.cmpi eq, %arg1, %c0_i32 : i32
    %1 = arith.extui %0 : i1 to i32
    %c0_i32_0 = arith.constant 0 : i32
    %2 = arith.cmpi ne, %1, %c0_i32_0 : i32
    scf.if %2 {
      %cst_9 = arith.constant 0.000000e+00 : f32
      %13 = vector.broadcast %cst_9 : f32 to vector<64x256xf32>
      %c0_10 = arith.constant 0 : index
      %c0_11 = arith.constant 0 : index
      %14 = vector.load %arg6[%c0_10, %c0_11] : memref<64x256xf32, #tpu.memory_space<vmem>>, vector<64x256xf32>
      tpu.vector_store %arg6[%c0_10, %c0_11], %13 {strides = array<i32>} : memref<64x256xf32, #tpu.memory_space<vmem>>, vector<64x256xf32>,
    } else {
    }
    %c0 = arith.constant 0 : index
    %c0_1 = arith.constant 0 : index
    %3 = vector.load %arg6[%c0, %c0_1] : memref<64x256xf32, #tpu.memory_space<vmem>>, vector<64x256xf32>
    %c0_2 = arith.constant 0 : index
    %c0_3 = arith.constant 0 : index
    %4 = vector.load %arg2[%c0_2, %c0_3] : memref<64x128xf32, #tpu.memory_space<vmem>>, vector<64x128xf32>
    %5 = arith.truncf %4 : vector<64x128xf32> to vector<64x128xbf16>
    %c0_4 = arith.constant 0 : index
    %c0_5 = arith.constant 0 : index
    %6 = vector.load %arg3[%c0_4, %c0_5] : memref<128x256xbf16, #tpu.memory_space<vmem>>, vector<128x256xbf16>
    %cst = arith.constant dense<0.000000e+00> : vector<64x256xf32>
    %7 = tpu.matmul %5, %6, %cst {dimension_numbers = #tpu.dot_dimension_numbers<[1], [0], [0], [1], [0, 0, 1, 1], [], []>} : vector<64x128xbf16>, vector<128x256xbf16>, vector<64x256xf32> -> vector<64x256xf32>
    %8 = arith.addf %3, %7 : vector<64x256xf32>
    %c0_6 = arith.constant 0 : index
    %c0_7 = arith.constant 0 : index
    %9 = vector.load %arg6[%c0_6, %c0_7] : memref<64x256xf32, #tpu.memory_space<vmem>>, vector<64x256xf32>
    tpu.vector_store %arg6[%c0_6, %c0_7], %8 {strides = array<i32>} : memref<64x256xf32, #tpu.memory_space<vmem>>, vector<64x256xf32>,
    %c2_i32 = arith.constant 2 : i32
    %10 = arith.cmpi eq, %arg1, %c2_i32 : i32
    %11 = arith.extui %10 : i1 to i32
    %c0_i32_8 = arith.constant 0 : i32
    %12 = arith.cmpi ne, %11, %c0_i32_8 : i32
    scf.if %12 {
      %c0_9 = arith.constant 0 : index
      %c0_10 = arith.constant 0 : index
      %13 = vector.load %arg6[%c0_9, %c0_10] : memref<64x256xf32, #tpu.memory_space<vmem>>, vector<64x256xf32>
      %c0_11 = arith.constant 0 : index
      %c0_12 = arith.constant 0 : index
      %14 = vector.load %arg4[%c0_11, %c0_12] : memref<1x256xf32, #tpu.memory_space<vmem>>, vector<1x256xf32>
      %15 = vector.broadcast %14 : vector<1x256xf32> to vector<64x256xf32>
      %16 = arith.addf %13, %15 : vector<64x256xf32>
      %cst_13 = arith.constant 0.000000e+00 : f32
      %17 = vector.broadcast %cst_13 : f32 to vector<64x256xf32>
      %18 = arith.maximumf %16, %17 : vector<64x256xf32>
      %19 = arith.truncf %18 : vector<64x256xf32> to vector<64x256xbf16>
      %c0_14 = arith.constant 0 : index
      %c0_15 = arith.constant 0 : index
      %20 = vector.load %arg5[%c0_14, %c0_15] : memref<64x256xbf16, #tpu.memory_space<vmem>>, vector<64x256xbf16>
      tpu.vector_store %arg5[%c0_14, %c0_15], %19 {strides = array<i32>} : memref<64x256xbf16, #tpu.memory_space<vmem>>, vector<64x256xbf16>,
    } else {
    }
    return
  }
  func.func @transform_0(%arg0: i32, %arg1: i32) -> (i32, i32) {
    %c0_i32 = arith.constant 0 : i32
    return %arg0, %arg1 : i32, i32
  }
  func.func @transform_1(%arg0: i32, %arg1: i32) -> (i32, i32) {
    %c0_i32 = arith.constant 0 : i32
    %c0_i32_0 = arith.constant 0 : i32
    return %arg1, %c0_i32 : i32, i32
  }
  func.func @transform_2(%arg0: i32, %arg1: i32) -> (i32, i32) {
    %c0_i32 = arith.constant 0 : i32
    %c0_i32_0 = arith.constant 0 : i32
    %c0_i32_1 = arith.constant 0 : i32
    return %c0_i32, %c0_i32_0 : i32, i32
  }
  func.func @transform_3(%arg0: i32, %arg1: i32) -> (i32, i32) {
    %c0_i32 = arith.constant 0 : i32
    %c0_i32_0 = arith.constant 0 : i32
    return %arg0, %c0_i32 : i32, i32
  }
}

</mosaic_0001>

<bundles_post_ra>
// kernel: _realnvp_forward_padded.2
= control target key start
LH: loop header
LB: loop body
LE: loop exit
PB: predicated region body
PF: predicated region fallthrough
CT: control target
= control target key end

     0   :  { %s1401_s0 = inlined_call_operand.hbm [shape: f32[192,384], index: 0, kind: input, shape index: {}]   ;;  %s1402_s1 = inlined_call_operand.hbm [shape: bf16[384,256], index: 1, kind: input, shape index: {}]   ;;  %s1403_s2 = inlined_call_operand.hbm [shape: f32[1,256], index: 2, kind: input, shape index: {}]   ;;  %s1404_s3 = inlined_call_operand.vmem [shape: bf16[192,256], index: 3, kind: output, shape index: {}]  }
   0x1   :  { %1410 = sst [smem:[#allocation17_spill]] %s1401_s0 }
   0x2   :  { %1411 = sst [smem:[#allocation18_spill]] %s1403_s2 }
   0x3   :  { %8 = vsyncpa [#allocation4], 0 }
   0x4   :  { %10 = vsyncpa [#allocation4 + $0x1], 0 }
   0x5   :  { %11 = vsyncpa [#allocation6], 0 }
   0x6   :  { %13 = vsyncpa [#allocation6 + $0x1], 0  ;;  %s1148_s12 = smov 0   ;;  %s1150_s13 = smov 0  }
   0x7   :  { %s1152_s14 = smov 0   ;;  %s1154_s15 = smov 0  }
   0x8   :  { %s1156_s16 = smov 0   ;;  %s1158_s17 = smov 0  }
   0x9   :  { %s1160_s18 = smov 0   ;;  %s1162_s19 = smov 0  }
   0xa   :  { %s1164_s20 = smov 0   ;;  %s1166_s21 = smov 0  }
   0xb   :  { %s1168_s22 = smov 0  }
   0xc LB: > { %1412 = sst [smem:[#allocation11_spill]] %s1101_s17  ;;  %s1405_s23 = sadd.s32 4294967295, %s1121_s22   ;;  %s1121_s22 = sphi %s1168_s22, %s19_s22   ;;  %s1117_s21 = sphi %s1166_s21, %s1432_s21   ;;  %s1113_s20 = sphi %s1164_s20, %s1439_s20   ;;  %s1109_s19 = sphi %s1162_s19, %s1430_s19   ;;  %s1105_s18 = sphi %s1160_s18, %s1438_s18   ;;  %s1101_s17 = sphi %s1158_s17, %s1429_s17   ;;  %s1097_s16 = sphi %s1156_s16, %s1437_s16   ;;  %s1093_s15 = sphi %s1154_s15, %s1436_s15   ;;  %s1089_s14 = sphi %s1152_s14, %s1435_s14   ;;  %s1085_s13 = sphi %s1150_s13, %s1434_s13   ;;  %s1081_s12 = sphi %s1148_s12, %s1433_s12  }
   0xd   : > { %1413 = sst [smem:[#allocation12_spill]] %s1105_s18  ;;  %p53_p0 = scmp.ne.s32.totalorder %s1097_s16, %s1093_s15 }
   0xe   : > { %1414 = sst [smem:[#allocation13_spill]] %s1117_s21  ;;  %p1203_p1 = scmp.eq.s32.totalorder %s1405_s23, 0 }
   0xf   : > { %p79_p2 = scmp.ne.s32.totalorder %s1085_s13, %s1081_s12  ;;  %p696_p3 = scmp.ge.s32.totalorder %s1121_s22, 1 }
  0x10   : > { %p137_p4 = scmp.lt.s32.totalorder %s1121_s22, 10  ;;  %p1212_p5 = por %p1203_p1, %p53_p0 }
  0x11   : > { %p1218_p6 = por %p79_p2, %p1203_p1  ;;  %s1419_s2 = sld [smem:[#allocation18_spill]] }
  0x12   : > { %p1222_p7 = pnand %p696_p3, %p137_p4  ;;  %s1123_s4 = smov [#allocation7]  }
  0x13   : > { %s151_s5 = sshll.u32 %s1123_s4, 4  ;;  %s28_s6 = sadd.s32 1, %s1113_s20  ;;  %s152_s5 = int_to_ptr.vmem [resolvable:$true] %s151_s5 }
  0x14   : > { %p826_p8 = pneg %p1222_p7  ;;  %p29_p10 = scmp.ge.s32.totalorder %s28_s6, 3 }
  0x15   : > { %s31_s7 = sadd.s32 1, %s1117_s21  ;;  %s40_s8 = sadd.s32 1, %s1101_s17 }
  0x16   : > { %p827_p9 = pnand %p826_p8, %p1203_p1  ;;  %p47_p11 = scmp.ne.s32.totalorder %s1101_s17, %s1097_s16 }
  0x17   : > { %s149_s30 = sshll.u32 %s1419_s2, 4  ;;  %s1441_s6 = smov (%p29_p10, %s28_s6), 0  ;;  %s150_s30 = int_to_ptr.hbm [resolvable:$true] %s149_s30 }
  0x18   : > { %829 = dma.hbm_to_vmem [thread:$0]  (!%p827_p9), %s150_s30, 32, %s152_s5, [#allocation6]  }
  0x19   : > { %1420 = sst [smem:[#allocation14_spill]] %s1441_s6  ;;  %s1443_s7 = smov (!%p29_p10, %s31_s7), %s1117_s21 }
  0x1a   : > { %s1243_s9 = ssub.s32 %s1113_s20, %s1441_s6  ;;  %p48_p12 = scmp.eq.s32.totalorder %s1121_s22, 0 }
  0x1b   : > { %p33_p13 = scmp.ge.s32.totalorder %s1443_s7, 3  ;;  %p64_p0 = scmp.eq.s32.totalorder %s1243_s9, 0 }
  0x1c   : > { %p1249_p2 = por %p48_p12, %p47_p11  ;;  %p838_p3 = scmp.lt.s32.totalorder %s1121_s22, 9 }
  0x1d   : > { %s1445_s7 = smov (%p33_p13, %s1443_s7), 0  ;;  %s162_s11 = sand.u32 1, %s1101_s17  }
  0x1e   : > { %1422 = sst [smem:[#allocation15_spill]] %s1445_s7  ;;  %s817_s12 = smul.u32 24, %s1117_s21 }
  0x1f   : > { %s35_s15 = ssub.s32 %s1117_s21, %s1445_s7  ;;  %s699_s29 = sshll.u32 %s162_s11, 6 }
  0x20   : > { %s37_s28 = sor.u32 %s1243_s9, %s35_s15  ;;  %s171_s30 = sadd.s32 %s1113_s20, %s817_s12 }
  0x21   : > { %p38_p4 = scmp.eq.s32.totalorder %s37_s28, 0  ;;  %s166_s4 = scalar_lea.vmem [#allocation3], %s699_s29 }
  0x22   : > { %s176_s5 = sshll.u32 %s166_s4, 4  ;;  %s702_s2 = sshll.u32 %s171_s30, 3  ;;  %s177_s5 = int_to_ptr.vmem [resolvable:$true] %s176_s5 }
  0x23   : > { %s1263_s23 = scalar_select %p38_p4, %s1101_s17, %s40_s8  }
  0x24   : > { %s1424_s0 = sld [smem:[#allocation17_spill]]  ;;  %p831_p8 = pnand %p838_p3, %p1249_p2 }
  0x25   : > { %1423 = sst [smem:[#allocation16_spill]] %s1263_s23  ;;  %s163_s28 = scalar_lea.sflag [#allocation4], %s162_s11 }
  0x26   : > { %s1124_s29 = smov 384   ;;  %s1125_s4 = smov 128  }
  0x27   : > { %s1126_s21 = smov 8   ;;  %s186_s8 = sand.u32 1, %s1121_s22  }
  0x28   : > { %s66_s30 = sadd.s32 1, %s1089_s14  ;;  %p73_p9 = scmp.ne.s32.totalorder %s1089_s14, %s1085_s13 }
  0x29   : > { %s1279_s23 = scalar_select %p64_p0, %s1089_s14, %s66_s30  }
  0x2a   : > { %s173_s15 = scalar_lea.hbm %s1424_s0, %s702_s2  ;;  %p75_p10 = por %p73_p9, %p48_p12 }
  0x2b   : > { %s174_s12 = sshll.u32 %s173_s15, 4  ;;  %s188_s2 = sand.u32 1, %s1089_s14   ;;  %s175_s12 = int_to_ptr.hbm [resolvable:$true] %s174_s12 }
  0x2c   : > { %833 = dma.hbm_to_vmem [thread:$0]  (!%p831_p8), %s175_s12, 1024, %s177_s5, %s163_s28, %s1124_s29, %s1125_s4, %s1126_s21  }
  0x2d   : > { %s703_s6 = sshll.u32 %s188_s2, 7  ;;  %s783_s7 = sshll.u32 %s1113_s20, 7 }
  0x2e   : > { %s196_s11 = scalar_lea.hbm %s1402_s1, %s783_s7  ;;  %s190_s17 = scalar_lea.vmem [#allocation5], %s703_s6 }
  0x2f   : > { %s197_s0 = sshll.u32 %s196_s11, 4  ;;  %s199_s18 = sshll.u32 %s190_s17, 4  ;;  %s198_s0 = int_to_ptr.hbm [resolvable:$true] %s197_s0  ;;  %s200_s18 = int_to_ptr.vmem [resolvable:$true] %s199_s18 }
  0x30   : > { %p834_p11 = pnand %p838_p3, %p75_p10  ;;  %s187_s5 = scalar_lea.sflag [#allocation6], %s186_s8 }
  0x31   : > { %211 = sbr.rel (%p1222_p7) target bundleno = 303 (0x12f), region = 32  ;;  %s213_s9 = sand.u32 (!%p1222_p7), 1, %s1097_s16  }
  0x32   : > { %836 = dma.hbm_to_vmem [thread:$0]  (!%p834_p11), %s198_s0, 2048, %s200_s18, %s187_s5, %s1125_s4, %s1125_s4, %s1126_s21  }
  0x33   : > { %s708_s12 = sshll.u32 (!%p1222_p7), %s213_s9, 6  ;;  %s214_s28 = scalar_lea.sflag (!%p1222_p7), [#allocation4], %s213_s9 }
  0x34   : > { %s1293_s29 = scalar_lea.vmem (!%p1222_p7), [#allocation3], %s708_s12 }
  0x36   : > { %1068 = dma.done.wait (%p1212_p5), %s214_s28, 1024  }
  0x37   : > { %1070 = vsyncadd (%p1212_p5), %s214_s28, 4294966272  ;;  %s1425_s17 = sadd.s32 4294967295, %s1121_s22   ;;  %s225_s18 = sand.u32 1, %s1085_s13  }
  0x38   : > { %s223_s0 = sand.u32 1, %s1425_s17   ;;  %s709_s21 = sshll.u32 %s225_s18, 7 }
  0x39   : > { %s224_s27 = scalar_lea.sflag [#allocation6], %s223_s0  ;;  %s1302_s4 = scalar_lea.vmem [#allocation5], %s709_s21 }
  0x3a   : > { %1072 = dma.done.wait (%p1218_p6), %s224_s27, 2048  }
  0x3b   : > { %1074 = vsyncadd (%p1218_p6), %s224_s27, 4294965248 }
  0x3c   : > { %1076 = dma.done.wait (%p1203_p1), [#allocation6], 32  }
  0x3d   : > { %1078 = vsyncadd (%p1203_p1), [#allocation6], 4294967264  ;;  %s711_s25 = sshll.u32 %s1109_s19, 3  ;;  %s1426_s7 = sld [smem:[#allocation12_spill]] }
  0x3e   : > { %p265_p5 = scmp.lt.s32.totalorder %s711_s25, 23 }
  0x40   : > { %s1447_s25 = smov (!%p265_p5, %s711_s25), 23 }
  0x41   : > { %s784_s8 = sshll.u32 %s1447_s25, 3 }
  0x42   : > { %s1316_s6 = scalar_lea.vmem %s1404_s3, %s784_s8 }
  0x43   : > { %p714_p7 = scmp.ne.s32.totalorder %s1426_s7, 0 }
  0x45   : > { %274 = sbr.rel (%p714_p7) target bundleno = 91 (0x5b), region = 48 }
  0x4a   : > { %v1127_v0 = vmov 0.0  }
  0x4b   : > { %275 = vst [vmem:[#allocation2 + $0x30] sm:$0xff] %v1127_v0 }
  0x4c   : > { %276 = vst [vmem:[#allocation2] sm:$0xff] %v1127_v0 }
  0x4d   : > { %277 = vst [vmem:[#allocation2 + $0x58] sm:$0xff] %v1127_v0 }
  0x4e   : > { %278 = vst [vmem:[#allocation2 + $0x18] sm:$0xff] %v1127_v0 }
  0x4f   : > { %279 = vst [vmem:[#allocation2 + $0x50] sm:$0xff] %v1127_v0 }
  0x50   : > { %280 = vst [vmem:[#allocation2 + $0x68] sm:$0xff] %v1127_v0 }
  0x51   : > { %281 = vst [vmem:[#allocation2 + $0x8] sm:$0xff] %v1127_v0 }
  0x52   : > { %282 = vst [vmem:[#allocation2 + $0x48] sm:$0xff] %v1127_v0 }
  0x53   : > { %283 = vst [vmem:[#allocation2 + $0x40] sm:$0xff] %v1127_v0 }
  0x54   : > { %284 = vst [vmem:[#allocation2 + $0x20] sm:$0xff] %v1127_v0 }
  0x55   : > { %285 = vst [vmem:[#allocation2 + $0x10] sm:$0xff] %v1127_v0 }
  0x56   : > { %286 = vst [vmem:[#allocation2 + $0x38] sm:$0xff] %v1127_v0 }
  0x57   : > { %287 = vst [vmem:[#allocation2 + $0x60] sm:$0xff] %v1127_v0 }
  0x58   : > { %288 = vst [vmem:[#allocation2 + $0x70] sm:$0xff] %v1127_v0 }
  0x59   : > { %289 = vst [vmem:[#allocation2 + $0x78] sm:$0xff] %v1127_v0 }
  0x5a   : > { %290 = vst [vmem:[#allocation2 + $0x28] sm:$0xff] %v1127_v0 }
  0x5b PF: > { %v773_v1 = vld [vmem:[%s1302_s4 + $0x70] sm:$0xf]  ;;  %v800_v2 = vld [vmem:[%s1302_s4 + $0x74] sm:$0xf0]  ;;  %v799_v3 = vld [vmem:[%s1302_s4 + $0x74] sm:$0xf] }
  0x5c   : > { %v774_v4 = vor.u32 %v800_v2, %v773_v1  ;;  %v775_v5 = vld [vmem:[%s1302_s4 + $0x78] sm:$0xf0]  ;;  %v765_v6 = vld [vmem:[%s1302_s4 + $0x60] sm:$0xf]  ;;  %v798_v7 = vld [vmem:[%s1302_s4 + $0x64] sm:$0xf0] }
  0x5d   : > { %v778_v8 = vor.u32 %v799_v3, %v775_v5  ;;  %v797_v9 = vld [vmem:[%s1302_s4 + $0x64] sm:$0xf]  ;;  %v767_v10 = vld [vmem:[%s1302_s4 + $0x68] sm:$0xf0]  ;;  %v766_v11 = vor.u32 %v798_v7, %v765_v6  ;;  %v757_v13 = vld [vmem:[%s1302_s4 + $0x50] sm:$0xf] }
  0x5e   : > { %415 = vmatpush.bf16.msra.mxu0 %v774_v4  ;;  %801 = vmatpush.bf16.msra.mxu2 %v774_v4  ;;  %v770_v12 = vor.u32 %v797_v9, %v767_v10  ;;  %v796_v14 = vld [vmem:[%s1302_s4 + $0x54] sm:$0xf0]  ;;  %v795_v15 = vld [vmem:[%s1302_s4 + $0x54] sm:$0xf]  ;;  %v759_v16 = vld [vmem:[%s1302_s4 + $0x58] sm:$0xf0] }
  0x5f   : > { %444 = vmatpush.bf16.msra.mxu1 %v778_v8  ;;  %809 = vmatpush.bf16.msra.mxu3 %v778_v8  ;;  %v758_v17 = vor.u32 %v796_v14, %v757_v13  ;;  %v762_v18 = vor.u32 %v795_v15, %v759_v16  ;;  %v749_v19 = vld [vmem:[%s1302_s4 + $0x40] sm:$0xf]  ;;  %v794_v20 = vld [vmem:[%s1302_s4 + $0x44] sm:$0xf0]  ;;  %v793_v21 = vld [vmem:[%s1302_s4 + $0x44] sm:$0xf] }
  0x60   : > { %v751_v22 = vld [vmem:[%s1302_s4 + $0x48] sm:$0xf0]  ;;  %v750_v23 = vor.u32 %v794_v20, %v749_v19  ;;  %v741_v25 = vld [vmem:[%s1302_s4 + $0x30] sm:$0xf]  ;;  %v792_v26 = vld [vmem:[%s1302_s4 + $0x34] sm:$0xf0] }
  0x61   : > { %v754_v24 = vor.u32 %v793_v21, %v751_v22  ;;  %v791_v27 = vld [vmem:[%s1302_s4 + $0x34] sm:$0xf]  ;;  %v743_v28 = vld [vmem:[%s1302_s4 + $0x38] sm:$0xf0]  ;;  %v742_v29 = vor.u32 %v792_v26, %v741_v25  ;;  %v733_v31 = vld [vmem:[%s1302_s4 + $0x20] sm:$0xf] }
  0x62   : > { %416 = vmatpush.bf16.msra.mxu0 %v766_v11  ;;  %802 = vmatpush.bf16.msra.mxu2 %v766_v11  ;;  %v746_v30 = vor.u32 %v791_v27, %v743_v28  ;;  %v790_v32 = vld [vmem:[%s1302_s4 + $0x24] sm:$0xf0]  ;;  %v789_v33 = vld [vmem:[%s1302_s4 + $0x24] sm:$0xf]  ;;  %v735_v34 = vld [vmem:[%s1302_s4 + $0x28] sm:$0xf0] }
  0x63   : > { %445 = vmatpush.bf16.msra.mxu1 %v770_v12  ;;  %810 = vmatpush.bf16.msra.mxu3 %v770_v12  ;;  %v734_v35 = vor.u32 %v790_v32, %v733_v31  ;;  %v738_v36 = vor.u32 %v789_v33, %v735_v34  ;;  %v725_v37 = vld [vmem:[%s1302_s4 + $0x10] sm:$0xf]  ;;  %v788_v38 = vld [vmem:[%s1302_s4 + $0x14] sm:$0xf0]  ;;  %v787_v39 = vld [vmem:[%s1302_s4 + $0x14] sm:$0xf] }
  0x64   : > { %v727_v40 = vld [vmem:[%s1302_s4 + $0x18] sm:$0xf0]  ;;  %v726_v41 = vor.u32 %v788_v38, %v725_v37  ;;  %v717_v43 = vld [vmem:[%s1302_s4] sm:$0xf]  ;;  %v786_v44 = vld [vmem:[%s1302_s4 + $0x4] sm:$0xf0] }
  0x65   : > { %v730_v42 = vor.u32 %v787_v39, %v727_v40  ;;  %v785_v45 = vld [vmem:[%s1302_s4 + $0x4] sm:$0xf]  ;;  %v719_v46 = vld [vmem:[%s1302_s4 + $0x8] sm:$0xf0]  ;;  %v718_v48 = vor.u32 %v786_v44, %v717_v43  ;;  %v309_v55 = vld [vmem:[%s1293_s29 + $0x10] sm:$0xff]  ;;  %s1427_s19 = sld [smem:[#allocation12_spill]] }
  0x66   : > { %417 = vmatpush.bf16.msra.mxu0 %v758_v17  ;;  %803 = vmatpush.bf16.msra.mxu2 %v758_v17  ;;  %v307_v47 = vld [vmem:[%s1293_s29] sm:$0xff]  ;;  %v308_v49 = vld [vmem:[%s1293_s29 + $0x8] sm:$0xff]  ;;  %v722_v52 = vor.u32 %v785_v45, %v719_v46  ;;  %v310_v56 = vld [vmem:[%s1293_s29 + $0x18] sm:$0xff] }
  0x67   : > { %446 = vmatpush.bf16.msra.mxu1 %v762_v18  ;;  %811 = vmatpush.bf16.msra.mxu3 %v762_v18  ;;  %v311_v50 = vld [vmem:[%s1293_s29 + $0x20] sm:$0xff]  ;;  %v312_v51 = vld [vmem:[%s1293_s29 + $0x28] sm:$0xff]  ;;  %v315_v53 = vpack.c.bf16 %v308_v49, %v307_v47  ;;  %v313_v57 = vld [vmem:[%s1293_s29 + $0x30] sm:$0xff]  ;;  %v316_v59 = vpack.c.bf16 %v310_v56, %v309_v55 }
  0x68   : > { %v317_v54 = vpack.c.bf16 %v312_v51, %v311_v50  ;;  %v314_v58 = vld [vmem:[%s1293_s29 + $0x38] sm:$0xff]  ;;  %v291_v61 = vld [vmem:[#allocation2 + $0x30] sm:$0xff]  ;;  %v292_v62 = vld [vmem:[#allocation2] sm:$0xff] }
  0x69   : > { %v318_v60 = vpack.c.bf16 %v314_v58, %v313_v57  ;;  %v299_v3 = vld [vmem:[#allocation2 + $0x40] sm:$0xff]  ;;  %v293_v6 = vld [vmem:[#allocation2 + $0x58] sm:$0xff]  ;;  %v301_v15 = vld [vmem:[#allocation2 + $0x10] sm:$0xff] }
  0x6a   : > { %418 = vmatpush.bf16.msra.mxu0 %v750_v23  ;;  %804 = vmatpush.bf16.msra.mxu2 %v750_v23  ;;  %v300_v4 = vld [vmem:[#allocation2 + $0x20] sm:$0xff]  ;;  %v294_v9 = vld [vmem:[#allocation2 + $0x18] sm:$0xff]  ;;  %v295_v18 = vld [vmem:[#allocation2 + $0x50] sm:$0xff] }
  0x6b   : > { %447 = vmatpush.bf16.msra.mxu1 %v754_v24  ;;  %812 = vmatpush.bf16.msra.mxu3 %v754_v24  ;;  %v302_v16 = vld [vmem:[#allocation2 + $0x38] sm:$0xff]  ;;  %v296_v21 = vld [vmem:[#allocation2 + $0x68] sm:$0xff]  ;;  %v303_v27 = vld [vmem:[#allocation2 + $0x60] sm:$0xff]  ;;  %p779_p1 = scmp.ne.s32.totalorder %s1427_s19, 2 }
  0x6c   : > { %v304_v28 = vld [vmem:[#allocation2 + $0x70] sm:$0xff]  ;;  %v298_v33 = vld [vmem:[#allocation2 + $0x48] sm:$0xff]  ;;  %v305_v39 = vld [vmem:[#allocation2 + $0x78] sm:$0xff] }
  0x6d   : > { %v306_v40 = vld [vmem:[#allocation2 + $0x28] sm:$0xff] }
  0x6e   : > { %419 = vmatpush.bf16.msra.mxu0 %v742_v29  ;;  %805 = vmatpush.bf16.msra.mxu2 %v742_v29 }
  0x6f   : > { %448 = vmatpush.bf16.msra.mxu1 %v746_v30  ;;  %813 = vmatpush.bf16.msra.mxu3 %v746_v30  ;;  %v297_v30 = vld [vmem:[#allocation2 + $0x8] sm:$0xff] }
  0x72   : > { %420 = vmatpush.bf16.msra.mxu0 %v734_v35  ;;  %806 = vmatpush.bf16.msra.mxu2 %v734_v35 }
  0x73   : > { %449 = vmatpush.bf16.msra.mxu1 %v738_v36  ;;  %814 = vmatpush.bf16.msra.mxu3 %v738_v36 }
  0x76   : > { %421 = vmatpush.bf16.msra.mxu0 %v726_v41  ;;  %807 = vmatpush.bf16.msra.mxu2 %v726_v41 }
  0x77   : > { %450 = vmatpush.bf16.msra.mxu1 %v730_v42  ;;  %815 = vmatpush.bf16.msra.mxu3 %v730_v42 }
  0x7a   : > { %422 = vmatpush.bf16.msra.mxu0 %v718_v48  ;;  %808 = vmatpush.bf16.msra.mxu2 %v718_v48 }
  0x7b   : > { %451 = vmatpush.bf16.msra.mxu1 %v722_v52  ;;  %816 = vmatpush.bf16.msra.mxu3 %v722_v52 }
  0x7d   : > { %423 = vmatmul.bf16.vlgmr.msra.gmra.mxu0 %v315_v53  ;;  %433 = vmatmul.bf16.vlgmr.msra.gmra.mxu2 %v317_v54 }
  0x7e   : > { %452 = vmatmul.bf16.vlgmr.msra.gmra.mxu1 %v315_v53  ;;  %462 = vmatmul.bf16.vlgmr.msra.gmra.mxu3 %v317_v54 }
  0x8d   : > { %428 = vmatmul.bf16.gmra.mxu0 %v316_v59  ;;  %438 = vmatmul.bf16.gmra.mxu2 %v318_v60 }
  0x8e   : > { %457 = vmatmul.bf16.gmra.mxu1 %v316_v59  ;;  %467 = vmatmul.bf16.gmra.mxu3 %v318_v60 }
  0xfa   : > { %v424_v63 = vpop.f32.mrf.mxu0 }
  0xfb   : > { %v473_v0 = vadd.f32 %v424_v63, %v291_v61  ;;  %v453_v1 = vpop.f32.mrf.mxu1 }
  0xfc   : > { %v474_v2 = vadd.f32 %v453_v1, %v292_v62 }
  0xfd   : > { %489 = vst [vmem:[#allocation2 + $0x30] sm:$0xff] %v473_v0 }
  0xfe   : > { %490 = vst [vmem:[#allocation2] sm:$0xff] %v474_v2 }
 0x100   : > { %v434_v5 = vpop.f32.mrf.mxu2 }
 0x101   : > { %v481_v7 = vadd.f32 %v434_v5, %v299_v3  ;;  %v463_v8 = vpop.f32.mrf.mxu3 }
 0x102   : > { %v482_v10 = vadd.f32 %v463_v8, %v300_v4  ;;  %v426_v11 = vpop.f32.mrf.mxu0 }
 0x103   : > { %497 = vst [vmem:[#allocation2 + $0x40] sm:$0xff] %v481_v7  ;;  %v475_v12 = vadd.f32 %v426_v11, %v293_v6  ;;  %v455_v13 = vpop.f32.mrf.mxu1 }
 0x104   : > { %498 = vst [vmem:[#allocation2 + $0x20] sm:$0xff] %v482_v10  ;;  %v476_v14 = vadd.f32 %v455_v13, %v294_v9 }
 0x105   : > { %491 = vst [vmem:[#allocation2 + $0x58] sm:$0xff] %v475_v12 }
 0x106   : > { %492 = vst [vmem:[#allocation2 + $0x18] sm:$0xff] %v476_v14 }
 0x108   : > { %v436_v17 = vpop.f32.mrf.mxu2 }
 0x109   : > { %v483_v19 = vadd.f32 %v436_v17, %v301_v15  ;;  %v465_v20 = vpop.f32.mrf.mxu3 }
 0x10a   : > { %v484_v22 = vadd.f32 %v465_v20, %v302_v16  ;;  %v429_v23 = vpop.f32.mrf.mxu0 }
 0x10b   : > { %499 = vst [vmem:[#allocation2 + $0x10] sm:$0xff] %v483_v19  ;;  %v477_v24 = vadd.f32 %v429_v23, %v295_v18  ;;  %v458_v25 = vpop.f32.mrf.mxu1 }
 0x10c   : > { %500 = vst [vmem:[#allocation2 + $0x38] sm:$0xff] %v484_v22  ;;  %v478_v26 = vadd.f32 %v458_v25, %v296_v21 }
 0x10d   : > { %493 = vst [vmem:[#allocation2 + $0x50] sm:$0xff] %v477_v24 }
 0x10e   : > { %494 = vst [vmem:[#allocation2 + $0x68] sm:$0xff] %v478_v26 }
 0x110   : > { %v439_v29 = vpop.f32.mrf.mxu2 }
 0x111   : > { %v485_v31 = vadd.f32 %v439_v29, %v303_v27  ;;  %v468_v32 = vpop.f32.mrf.mxu3 }
 0x112   : > { %v486_v34 = vadd.f32 %v468_v32, %v304_v28  ;;  %v431_v35 = vpop.f32.mrf.mxu0 }
 0x113   : > { %501 = vst [vmem:[#allocation2 + $0x60] sm:$0xff] %v485_v31  ;;  %v479_v36 = vadd.f32 %v431_v35, %v297_v30  ;;  %v460_v37 = vpop.f32.mrf.mxu1 }
 0x114   : > { %502 = vst [vmem:[#allocation2 + $0x70] sm:$0xff] %v486_v34  ;;  %v480_v38 = vadd.f32 %v460_v37, %v298_v33 }
 0x115   : > { %495 = vst [vmem:[#allocation2 + $0x8] sm:$0xff] %v479_v36 }
 0x116   : > { %496 = vst [vmem:[#allocation2 + $0x48] sm:$0xff] %v480_v38 }
 0x118   : > { %v441_v41 = vpop.f32.mrf.mxu2  ;;  %508 = sbr.rel (%p779_p1) target bundleno = 303 (0x12f), region = 52 }
 0x119   : > { %v487_v42 = vadd.f32 %v441_v41, %v305_v39  ;;  %v470_v43 = vpop.f32.mrf.mxu3 }
 0x11a   : > { %v488_v44 = vadd.f32 %v470_v43, %v306_v40 }
 0x11b   : > { %503 = vst [vmem:[#allocation2 + $0x78] sm:$0xff] %v487_v42 }
 0x11c   : > { %504 = vst [vmem:[#allocation2 + $0x28] sm:$0xff] %v488_v44 }
 0x11d   : > { %v509_v45 = vld [vmem:[#allocation2 + $0x30] sm:$0xff]  ;;  %v510_v46 = vld [vmem:[#allocation2] sm:$0xff]  ;;  %v511_v50 = vld [vmem:[#allocation2 + $0x58] sm:$0xff] }
 0x11e   : > { %v525_v47 = vld [vmem:[#allocation7] sm:$0x3]  ;;  %v512_v51 = vld [vmem:[#allocation2 + $0x18] sm:$0xff]  ;;  %v513_v52 = vld [vmem:[#allocation2 + $0x50] sm:$0xff] }
 0x11f   : > { %v527_v48 = vperm.slane %v525_v47, 0  ;;  %v528_v49 = vperm.slane %v525_v47, 1  ;;  %v514_v53 = vld [vmem:[#allocation2 + $0x68] sm:$0xff]  ;;  %v517_v0 = vld [vmem:[#allocation2 + $0x40] sm:$0xff]  ;;  %v519_v6 = vld [vmem:[#allocation2 + $0x10] sm:$0xff] }
 0x120   : > { %v515_v54 = vld [vmem:[#allocation2 + $0x8] sm:$0xff]  ;;  %v518_v1 = vld [vmem:[#allocation2 + $0x20] sm:$0xff]  ;;  %v520_v7 = vld [vmem:[#allocation2 + $0x38] sm:$0xff] }
 0x121   : > { %v516_v55 = vld [vmem:[#allocation2 + $0x48] sm:$0xff]  ;;  %v531_v56 = vadd.f32 %v527_v48, %v509_v45  ;;  %v532_v57 = vadd.f32 %v528_v49, %v510_v46  ;;  %v533_v58 = vadd.f32 %v527_v48, %v511_v50  ;;  %v534_v59 = vadd.f32 %v528_v49, %v512_v51  ;;  %v521_v12 = vld [vmem:[#allocation2 + $0x60] sm:$0xff]  ;;  %v522_v13 = vld [vmem:[#allocation2 + $0x70] sm:$0xff] }
 0x122   : > { %v535_v60 = vadd.f32 %v527_v48, %v513_v52  ;;  %v536_v61 = vadd.f32 %v528_v49, %v514_v53  ;;  %v537_v62 = vadd.f32 %v527_v48, %v515_v54  ;;  %v538_v63 = vadd.f32 %v528_v49, %v516_v55  ;;  %v523_v18 = vld [vmem:[#allocation2 + $0x78] sm:$0xff] }
 0x123   : > { %v547_v2 = vmax.f32 %v531_v56, 0.0  ;;  %v548_v3 = vmax.f32 %v532_v57, 0.0  ;;  %v549_v4 = vmax.f32 %v533_v58, 0.0  ;;  %v550_v5 = vmax.f32 %v534_v59, 0.0  ;;  %v524_v19 = vld [vmem:[#allocation2 + $0x28] sm:$0xff] }
 0x124   : > { %v551_v8 = vmax.f32 %v535_v60, 0.0  ;;  %v552_v9 = vmax.f32 %v536_v61, 0.0  ;;  %v553_v10 = vmax.f32 %v537_v62, 0.0  ;;  %v554_v11 = vmax.f32 %v538_v63, 0.0 }
 0x125   : > { %v563_v14 = vpack.c.bf16 %v548_v3, %v547_v2  ;;  %v564_v15 = vpack.c.bf16 %v550_v5, %v549_v4  ;;  %v539_v16 = vadd.f32 %v527_v48, %v517_v0  ;;  %v540_v17 = vadd.f32 %v528_v49, %v518_v1 }
 0x126   : > { %v565_v20 = vpack.c.bf16 %v552_v9, %v551_v8  ;;  %v566_v21 = vpack.c.bf16 %v554_v11, %v553_v10  ;;  %v541_v22 = vadd.f32 %v527_v48, %v519_v6  ;;  %v542_v23 = vadd.f32 %v528_v49, %v520_v7 }
 0x127   : > { %571 = vst [vmem:[%s1316_s6] sm:$0xff] %v563_v14  ;;  %v555_v24 = vmax.f32 %v539_v16, 0.0  ;;  %v556_v25 = vmax.f32 %v540_v17, 0.0  ;;  %v543_v26 = vadd.f32 %v527_v48, %v521_v12  ;;  %v544_v27 = vadd.f32 %v528_v49, %v522_v13 }
 0x128   : > { %572 = vst [vmem:[%s1316_s6 + $0x8] sm:$0xff] %v564_v15  ;;  %v557_v28 = vmax.f32 %v541_v22, 0.0  ;;  %v558_v29 = vmax.f32 %v542_v23, 0.0  ;;  %v545_v30 = vadd.f32 %v527_v48, %v523_v18  ;;  %v546_v31 = vadd.f32 %v528_v49, %v524_v19 }
 0x129   : > { %573 = vst [vmem:[%s1316_s6 + $0x10] sm:$0xff] %v565_v20  ;;  %v567_v32 = vpack.c.bf16 %v556_v25, %v555_v24  ;;  %v559_v33 = vmax.f32 %v543_v26, 0.0  ;;  %v560_v34 = vmax.f32 %v544_v27, 0.0 }
 0x12a   : > { %574 = vst [vmem:[%s1316_s6 + $0x18] sm:$0xff] %v566_v21  ;;  %v568_v35 = vpack.c.bf16 %v558_v29, %v557_v28  ;;  %v561_v36 = vmax.f32 %v545_v30, 0.0  ;;  %v562_v37 = vmax.f32 %v546_v31, 0.0 }
 0x12b   : > { %575 = vst [vmem:[%s1316_s6 + $0x20] sm:$0xff] %v567_v32  ;;  %v569_v38 = vpack.c.bf16 %v560_v34, %v559_v33 }
 0x12c   : > { %576 = vst [vmem:[%s1316_s6 + $0x28] sm:$0xff] %v568_v35  ;;  %v570_v39 = vpack.c.bf16 %v562_v37, %v561_v36 }
 0x12d   : > { %577 = vst [vmem:[%s1316_s6 + $0x30] sm:$0xff] %v569_v38 }
 0x12e   : > { %578 = vst [vmem:[%s1316_s6 + $0x38] sm:$0xff] %v570_v39 }
 0x12f PF: > { %s19_s22 = sadd.s32 1, %s1121_s22   ;;  %s1428_s24 = sld [smem:[#allocation11_spill]] }
 0x130   : > { %p16_p6 = scmp.ge.s32.totalorder %s19_s22, 11   ;;  %s1429_s17 = sld [smem:[#allocation16_spill]] }
 0x131   : > { %s1430_s19 = sld [smem:[#allocation13_spill]]  ;;  %s1433_s12 = smov %s1085_s13 }
 0x132   : > { %s1431_s26 = sld [smem:[#allocation14_spill]]  ;;  %s1434_s13 = smov %s1089_s14 }
 0x133   : > { %s1432_s21 = sld [smem:[#allocation15_spill]]  ;;  %s1435_s14 = smov %s1279_s23 }
 0x134   : > { %s1436_s15 = smov %s1097_s16  ;;  %s1438_s18 = smov %s1113_s20 }
 0x135   : > { %s1437_s16 = smov %s1428_s24  ;;  %18 = sbr.rel (!%p16_p6) target bundleno = 12 (0xc), region = 97 }
 0x138   : > { %s1439_s20 = smov %s1431_s26 }
 0x13a   :  { %603 = vsyncpa [#allocation4], 1 }
 0x13b   :  { %605 = vsyncpa [#allocation4 + $0x1], 1 }
 0x13c   :  { %606 = vsyncpa [#allocation6], 1 }
 0x13d   :  { %608 = vsyncpa [#allocation6 + $0x1], 1 }

// kernel: _realnvp_forward_padded.3
= control target key start
LH: loop header
LB: loop body
LE: loop exit
PB: predicated region body
PF: predicated region fallthrough
CT: control target
= control target key end

     0   :  { %s2425_s0 = inlined_call_operand.hbm [shape: f32[192,384], index: 0, kind: input, shape index: {}]   ;;  %s2426_s1 = inlined_call_operand.hbm [shape: f32[1,384], index: 1, kind: input, shape index: {}]   ;;  %s2427_s2 = inlined_call_operand.vmem [shape: bf16[192,256], index: 2, kind: input, shape index: {}]   ;;  %s2428_s3 = inlined_call_operand.hbm [shape: bf16[128,384], index: 3, kind: input, shape index: {}]   ;;  %s2429_s4 = inlined_call_operand.vmem [shape: f32[1,384], index: 4, kind: input, shape index: {}]   ;;  %s2430_s5 = inlined_call_operand.hbm [shape: bf16[128,384], index: 5, kind: input, shape index: {}]   ;;  %s2431_s6 = inlined_call_operand.vmem [shape: f32[1,384], index: 6, kind: input, shape index: {}]   ;;  %s2432_s7 = inlined_call_operand.hbm [shape: f32[192,384], index: 7, kind: output, shape index: {0}]   ;;  %s2433_s8 = inlined_call_operand.hbm [shape: f32[192,128], index: 8, kind: output, shape index: {1}]  }
   0x1   :  { %2461 = sst [smem:[#allocation40_spill]] %s2425_s0 }
   0x2   :  { %2462 = sst [smem:[#allocation41_spill]] %s2426_s1 }
   0x3   :  { %2463 = sst [smem:[#allocation42_spill]] %s2427_s2 }
   0x4   :  { %2464 = sst [smem:[#allocation43_spill]] %s2429_s4 }
   0x5   :  { %2465 = sst [smem:[#allocation44_spill]] %s2431_s6 }
   0x6   :  { %2466 = sst [smem:[#allocation45_spill]] %s2432_s7 }
   0x7   :  { %2467 = sst [smem:[#allocation46_spill]] %s2433_s8 }
   0x8   :  { %14 = vsyncpa [#allocation4], 0 }
   0x9   :  { %16 = vsyncpa [#allocation4 + $0x1], 0 }
   0xa   :  { %17 = vsyncpa [#allocation7], 0 }
   0xb   :  { %19 = vsyncpa [#allocation7 + $0x1], 0 }
   0xc   :  { %20 = vsyncpa [#allocation10], 0 }
   0xd   :  { %22 = vsyncpa [#allocation10 + $0x1], 0 }
   0xe   :  { %23 = vsyncpa [#allocation5], 0 }
   0xf   :  { %25 = vsyncpa [#allocation5 + $0x1], 0 }
  0x10   :  { %26 = vsyncpa [#allocation13], 0 }
  0x11   :  { %28 = vsyncpa [#allocation13 + $0x1], 0  ;;  %s1930_s27 = smov 0   ;;  %s1932_s28 = smov 0  }
  0x12   :  { %s1934_s29 = smov 0   ;;  %s1936_s30 = smov 0  }
  0x13   :  { %s1938_s9 = smov 0   ;;  %s1940_s10 = smov 0  }
  0x14   :  { %s1942_s11 = smov 0   ;;  %s1944_s12 = smov 0  }
  0x15   :  { %s1946_s13 = smov 0   ;;  %s1948_s14 = smov 0  }
  0x16   :  { %s1950_s15 = smov 0   ;;  %s1952_s16 = smov 0  }
  0x17   :  { %s1954_s17 = smov 0   ;;  %s1956_s18 = smov 0  }
  0x18 LB: > { %2468 = sst [smem:[#allocation19_spill]] %s1821_s27  ;;  %s2001_s19 = sadd.s32 4294967295, %s1873_s18   ;;  %s1873_s18 = sphi %s1956_s18, %s34_s18   ;;  %s1869_s17 = sphi %s1954_s17, %s2542_s17   ;;  %s1865_s16 = sphi %s1952_s16, %s2546_s16   ;;  %s1861_s15 = sphi %s1950_s15, %s2540_s15   ;;  %s1857_s14 = sphi %s1948_s14, %s2545_s14   ;;  %s1853_s13 = sphi %s1946_s13, %s2539_s13   ;;  %s1849_s12 = sphi %s1944_s12, %s2544_s12   ;;  %s1845_s11 = sphi %s1942_s11, %s2543_s11   ;;  %s1841_s10 = sphi %s1940_s10, %s2537_s10   ;;  %s1837_s9 = sphi %s1938_s9, %s2536_s9   ;;  %s1833_s30 = sphi %s1936_s30, %s2535_s30   ;;  %s1829_s29 = sphi %s1934_s29, %s2534_s29   ;;  %s1825_s28 = sphi %s1932_s28, %s2533_s28   ;;  %s1821_s27 = sphi %s1930_s27, %s2532_s27  }
  0x19   : > { %2469 = sst [smem:[#allocation20_spill]] %s1825_s28  ;;  %s1205_s20 = sadd.s32 4294967294, %s1873_s18  }
  0x1a   : > { %2470 = sst [smem:[#allocation21_spill]] %s1829_s29  ;;  %s43_s21 = sadd.s32 1, %s1865_s16 }
  0x1b   : > { %2471 = sst [smem:[#allocation22_spill]] %s1837_s9  ;;  %s46_s22 = sadd.s32 1, %s1869_s17 }
  0x1c   : > { %2472 = sst [smem:[#allocation23_spill]] %s1841_s10  ;;  %p44_p0 = scmp.ge.s32.totalorder %s43_s21, 3 }
  0x1d   : > { %2473 = sst [smem:[#allocation24_spill]] %s1845_s11  ;;  %s55_s23 = sadd.s32 1, %s1853_s13 }
  0x1e   : > { %2474 = sst [smem:[#allocation25_spill]] %s1853_s13  ;;  %p62_p1 = scmp.ne.s32.totalorder %s1853_s13, %s1849_s12 }
  0x1f   : > { %2475 = sst [smem:[#allocation26_spill]] %s1857_s14  ;;  %p63_p2 = scmp.eq.s32.totalorder %s1873_s18, 0 }
  0x20   : > { %2476 = sst [smem:[#allocation27_spill]] %s1861_s15  ;;  %s2548_s21 = smov (%p44_p0, %s43_s21), 0 }
  0x21   : > { %2477 = sst [smem:[#allocation28_spill]] %s1869_s17  ;;  %s2550_s22 = smov (!%p44_p0, %s46_s22), %s1869_s17 }
  0x22   : > { %2478 = sst [smem:[#allocation29_spill]] %s1873_s18  ;;  %s51_s24 = ssub.s32 %s1865_s16, %s2548_s21 }
  0x23   : > { %2479 = sst [smem:[#allocation30_spill]] %s2548_s21  ;;  %p2020_p3 = por %p63_p2, %p62_p1 }
  0x24   : > { %p48_p4 = scmp.ge.s32.totalorder %s2550_s22, 3  ;;  %p2437_p5 = scmp.ne.s32.totalorder %s1849_s12, %s1845_s11 }
  0x25   : > { %p69_p6 = scmp.eq.s32.totalorder %s2001_s19, 0  ;;  %p79_p7 = scmp.eq.s32.totalorder %s51_s24, 0 }
  0x26   : > { %s2552_s22 = smov (%p48_p4, %s2550_s22), 0  ;;  %s81_s21 = sadd.s32 1, %s1841_s10 }
  0x27   : > { %2481 = sst [smem:[#allocation31_spill]] %s2552_s22  ;;  %p2034_p8 = por %p69_p6, %p2437_p5 }
  0x28   : > { %s50_s8 = ssub.s32 %s1869_s17, %s2552_s22  ;;  %p88_p9 = scmp.ne.s32.totalorder %s1841_s10, %s1837_s9 }
  0x29   : > { %s52_s7 = sor.u32 %s51_s24, %s50_s8  ;;  %p94_p10 = scmp.ne.s32.totalorder %s1837_s9, %s1833_s30 }
  0x2a   : > { %p53_p11 = scmp.eq.s32.totalorder %s52_s7, 0  ;;  %p2047_p12 = por %p88_p9, %p63_p2 }
  0x2b   : > { %s2052_s4 = scalar_select %p79_p7, %s1841_s10, %s81_s21  }
  0x2c   : > { %s2055_s2 = scalar_select %p53_p11, %s1853_s13, %s55_s23  }
  0x2d   : > { %2484 = sst [smem:[#allocation32_spill]] %s2052_s4  ;;  %p2059_p13 = por %p94_p10, %p69_p6 }
  0x2e   : > { %2485 = sst [smem:[#allocation33_spill]] %s2055_s2  ;;  %p250_p0 = scmp.eq.s32.totalorder %s2001_s19, 8 }
  0x2f   : > { %s2486_s24 = scalar_select %p2059_p13, 1, 0 }
  0x30   : > { %p256_p4 = scmp.eq.s32.totalorder %s1205_s20, 8  ;;  %p263_p5 = scmp.eq.s32.totalorder %s50_s8, 0 }
  0x31   : > { %2487 = sst [smem:[#allocation34_spill]] %s2486_s24  ;;  %p2067_p2 = por %p250_p0, %p62_p1 }
  0x32   : > { %s265_s30 = sadd.s32 1, %s1829_s29  ;;  %p2490_p7 = scmp.ne.s32.totalorder %s1849_s12, %s1845_s11 }
  0x33   : > { %s2488_s7 = scalar_select %p2067_p2, 1, 0 }
  0x34   : > { %p2075_p9 = por %p256_p4, %p2490_p7  ;;  %p275_p6 = scmp.ne.s32.totalorder %s1829_s29, %s1825_s28 }
  0x35   : > { %2489 = sst [smem:[#allocation35_spill]] %s2488_s7  ;;  %p281_p11 = scmp.ne.s32.totalorder %s1825_s28, %s1821_s27 }
  0x36   : > { %s2491_s21 = scalar_select %p2075_p9, 1, 0 }
  0x37   : > { %s2082_s23 = scalar_select %p263_p5, %s1829_s29, %s265_s30  }
  0x38   : > { %2492 = sst [smem:[#allocation36_spill]] %s2491_s21  ;;  %p2084_p10 = por %p275_p6, %p250_p0 }
  0x39   : > { %2493 = sst [smem:[#allocation37_spill]] %s2082_s23  ;;  %p1408_p1 = scmp.lt.s32.totalorder %s1873_s18, 9 }
  0x3a   : > { %s2494_s22 = scalar_select %p2084_p10, 1, 0 }
  0x3b   : > { %p2091_p13 = por %p281_p11, %p256_p4  ;;  %s326_s20 = sand.u32 1, %s1873_s18  }
  0x3c   : > { %2495 = sst [smem:[#allocation38_spill]] %s2494_s22  ;;  %p2098_p7 = pnand %p1408_p1, %p2020_p3 }
  0x3d   : > { %s2496_s8 = scalar_select %p2091_p13, 1, 0 }
  0x3e   : > { %s2103_s30 = sand.u32 1, %s1841_s10   ;;  %s2499_s1 = sld [smem:[#allocation41_spill]] }
  0x3f   : > { %2497 = sst [smem:[#allocation39_spill]] %s2496_s8  ;;  %s329_s21 = scalar_lea.vmem [#allocation6], %s2103_s30 }
  0x40   : > { %s336_s11 = sshll.u32 %s329_s21, 4  ;;  %p2112_p3 = pnand %p1408_p1, %p2047_p12  ;;  %s337_s11 = int_to_ptr.vmem [resolvable:$true] %s336_s11 }
  0x41   : > { %s1212_s10 = sshll.u32 %s2103_s30, 6  ;;  %p1216_p5 = scmp.ge.s32.totalorder %s1873_s18, 1 }
  0x42   : > { %s357_s23 = scalar_lea.vmem [#allocation8], %s1212_s10  ;;  %s384_s6 = scalar_lea.vmem [#allocation9], %s1212_s10 }
  0x43   : > { %s364_s8 = sshll.u32 %s357_s23, 4  ;;  %p405_p12 = scmp.lt.s32.totalorder %s1873_s18, 10  ;;  %s2123_s8 = int_to_ptr.vmem [resolvable:$true] %s364_s8 }
  0x44   : > { %s332_s29 = scalar_lea.hbm %s2499_s1, %s1865_s16  ;;  %s2118_s1 = scalar_lea.sflag [#allocation7], %s326_s20 }
  0x45   : > { %s334_s27 = sshll.u32 %s332_s29, 4  ;;  %s391_s29 = sshll.u32 %s384_s6, 4  ;;  %s335_s27 = int_to_ptr.hbm [resolvable:$true] %s334_s27  ;;  %s2127_s29 = int_to_ptr.vmem [resolvable:$true] %s391_s29 }
  0x46   : > { %1394 = dma.hbm_to_vmem [thread:$0]  (!%p2112_p3), %s335_s27, 16, %s337_s11, %s2118_s1  }
  0x47   : > { %p2129_p0 = pnand %p1216_p5, %p405_p12  ;;  %s302_s4 = sand.u32 1, %s1853_s13  }
  0x48   : > { %s1374_s20 = smul.u32 24, %s1869_s17  ;;  %s1208_s23 = sshll.u32 %s302_s4, 6 }
  0x49   : > { %s306_s11 = scalar_lea.vmem [#allocation3], %s1208_s23  ;;  %s2502_s0 = sld [smem:[#allocation40_spill]] }
  0x4a   : > { %s311_s22 = sadd.s32 %s1865_s16, %s1374_s20  ;;  %s316_s7 = sshll.u32 %s306_s11, 4  ;;  %s317_s7 = int_to_ptr.vmem [resolvable:$true] %s316_s7 }
  0x4b   : > { %s1211_s27 = sshll.u32 %s311_s22, 3  ;;  %s2503_s15 = sshll.u32 %s1865_s16, 2 }
  0x4c   : > { %s361_s20 = scalar_lea.hbm %s2428_s3, %s2503_s15  ;;  %s303_s22 = scalar_lea.sflag [#allocation4], %s302_s4 }
  0x4d   : > { %s1875_s23 = smov 384   ;;  %s1876_s11 = smov 128  }
  0x4e   : > { %s1877_s17 = smov 8   ;;  %s362_s14 = sshll.u32 %s361_s20, 4  ;;  %s363_s14 = int_to_ptr.hbm [resolvable:$true] %s362_s14 }
  0x4f   : > { %s313_s6 = scalar_lea.hbm %s2502_s0, %s1211_s27  ;;  %s2504_s27 = smov %s2503_s15 }
  0x50   : > { %s314_s18 = sshll.u32 %s313_s6, 4  ;;  %s388_s0 = scalar_lea.hbm %s2430_s5, %s2504_s27  ;;  %s315_s18 = int_to_ptr.hbm [resolvable:$true] %s314_s18 }
  0x51   : > { %1391 = dma.hbm_to_vmem [thread:$0]  (!%p2098_p7), %s315_s18, 1024, %s317_s7, %s303_s22, %s1875_s23, %s1876_s11, %s1877_s17  }
  0x52   : > { %s1878_s24 = smov 192   ;;  %s1879_s9 = smov 64  }
  0x53   : > { %s1880_s28 = smov 4   ;;  %s389_s13 = sshll.u32 %s388_s0, 4  ;;  %s390_s13 = int_to_ptr.hbm [resolvable:$true] %s389_s13 }
  0x54   : > { %1397 = dma.hbm_to_vmem [thread:$0]  (!%p2112_p3), %s363_s14, 1024, %s2123_s8, %s2118_s1, %s1878_s24, %s1879_s9, %s1880_s28  }
  0x55   : > { %s381_s15 = scalar_lea.sflag [#allocation10], %s2103_s30  ;;  %409 = sbr.rel (%p2129_p0) target bundleno = 522 (0x20a), region = 48 }
  0x56   : > { %1400 = dma.hbm_to_vmem [thread:$0]  (!%p2112_p3), %s390_s13, 1024, %s2127_s29, %s381_s15, %s1878_s24, %s1879_s9, %s1880_s28  }
  0x57   : > { %s2162_s2 = sand.u32 (!%p2129_p0), 1, %s1849_s12  }
  0x58   : > { %s1217_s17 = sshll.u32 (!%p2129_p0), %s2162_s2, 6  ;;  %s412_s18 = scalar_lea.sflag (!%p2129_p0), [#allocation4], %s2162_s2 }
  0x59   : > { %s2166_s7 = scalar_lea.vmem (!%p2129_p0), [#allocation3], %s1217_s17 }
  0x5a   : > { %1800 = dma.done.wait (%p2034_p8), %s412_s18, 1024  }
  0x5b   : > { %1802 = vsyncadd (%p2034_p8), %s412_s18, 4294966272  ;;  %s2505_s0 = sld [smem:[#allocation22_spill]]  ;;  %s421_s9 = sand.u32 1, %s2001_s19  }
  0x5c   : > { %s2506_s1 = sld [smem:[#allocation34_spill]]  ;;  %s422_s8 = scalar_lea.sflag [#allocation7], %s421_s9 }
  0x61   : > { %s2174_s24 = sand.u32 1, %s2505_s0  }
  0x62   : > { %s424_s30 = scalar_lea.vmem [#allocation6], %s2174_s24  ;;  %p2507_p4 = scmp.ne.s32.totalorder %s2506_s1, 0 }
  0x64   : > { %1804 = dma.done.wait (%p2507_p4), %s422_s8, 1040  }
  0x65   : > { %1806 = vsyncadd (%p2507_p4), %s422_s8, 4294966256  ;;  %s1218_s25 = sshll.u32 %s2174_s24, 6  ;;  %s441_s4 = scalar_lea.sflag [#allocation10], %s2174_s24 }
  0x66   : > { %s2182_s26 = scalar_lea.vmem [#allocation8], %s1218_s25  ;;  %s2185_s29 = scalar_lea.vmem [#allocation9], %s1218_s25 }
  0x67   : > { %1808 = dma.done.wait (%p2507_p4), %s441_s4, 1024  }
  0x68   : > { %1810 = vsyncadd (%p2507_p4), %s441_s4, 4294966272  ;;  %s2508_s19 = sld [smem:[#allocation20_spill]] }
  0x69   : > { %s2509_s21 = sld [smem:[#allocation27_spill]] }
  0x6a   : > { %s2510_s20 = sld [smem:[#allocation26_spill]] }
  0x6b   : > { %s2511_s28 = sld [smem:[#allocation42_spill]] }
  0x6c   : > { %s2512_s0 = sld [smem:[#allocation43_spill]] }
  0x6d   : > { %s2513_s25 = sld [smem:[#allocation44_spill]] }
  0x6e   : > { %s506_s22 = sand.u32 1, %s2508_s19   ;;  %s2212_s19 = scalar_lea.vmem [#allocation11], %s1217_s17 }
  0x6f   : > { %s1221_s23 = sshll.u32 %s506_s22, 6  ;;  %s1222_s11 = sshll.u32 %s2509_s21, 3 }
  0x70   : > { %p511_p8 = scmp.lt.s32.totalorder %s1222_s11, 23  ;;  %p517_p6 = scmp.lt.s32.totalorder %s2510_s20, 2 }
  0x71   : > { %s2214_s21 = scalar_lea.vmem [#allocation12], %s1221_s23  ;;  %p1225_p11 = scmp.ne.s32.totalorder %s2510_s20, 0 }
  0x72   : > { %s2554_s11 = smov (!%p511_p8, %s1222_s11), 23 }
  0x73   : > { %s2197_s14 = scalar_select %p517_p6, %s2510_s20, 2 }
  0x74   : > { %s1332_s27 = sshll.u32 %s2554_s11, 3  ;;  %528 = sbr.rel (%p1225_p11) target bundleno = 130 (0x82), region = 68 }
  0x75   : > { %s2202_s13 = scalar_lea.vmem %s2511_s28, %s1332_s27  ;;  %s519_s1 = scalar_lea.vmem %s2512_s0, %s2197_s14 }
  0x76   : > { %s522_s4 = scalar_lea.vmem %s2513_s25, %s2197_s14 }
  0x79   : > { %v1881_v0 = vmov 0.0  }
  0x7a   : > { %529 = vst [vmem:[#allocation2 + $0x30] sm:$0xff] %v1881_v0 }
  0x7b   : > { %530 = vst [vmem:[#allocation2] sm:$0xff] %v1881_v0 }
  0x7c   : > { %531 = vst [vmem:[#allocation2 + $0x18] sm:$0xff] %v1881_v0 }
  0x7d   : > { %532 = vst [vmem:[#allocation2 + $0x10] sm:$0xff] %v1881_v0 }
  0x7e   : > { %533 = vst [vmem:[#allocation2 + $0x8] sm:$0xff] %v1881_v0 }
  0x7f   : > { %534 = vst [vmem:[#allocation2 + $0x20] sm:$0xff] %v1881_v0 }
  0x80   : > { %535 = vst [vmem:[#allocation2 + $0x28] sm:$0xff] %v1881_v0 }
  0x81   : > { %536 = vst [vmem:[#allocation2 + $0x38] sm:$0xff] %v1881_v0 }
  0x82 PF: > { %v1344_v1 = vld [vmem:[%s2182_s26 + $0x38] sm:$0xff]  ;;  %v1343_v3 = vld [vmem:[%s2182_s26 + $0x30] sm:$0xff]  ;;  %v1342_v5 = vld [vmem:[%s2182_s26 + $0x28] sm:$0xff] }
  0x83   : > { %v1356_v2 = vld [vmem:[%s2185_s29 + $0x38] sm:$0xff]  ;;  %647 = vmatpush.bf16.msra.mxu0 %v1344_v1  ;;  %1358 = vmatpush.bf16.msra.mxu2 %v1344_v1  ;;  %v1355_v4 = vld [vmem:[%s2185_s29 + $0x30] sm:$0xff]  ;;  %v1354_v6 = vld [vmem:[%s2185_s29 + $0x28] sm:$0xff] }
  0x84   : > { %1366 = vmatpush.bf16.msra.mxu3 %v1356_v2  ;;  %784 = vmatpush.bf16.msra.mxu1 %v1356_v2  ;;  %v1341_v7 = vld [vmem:[%s2182_s26 + $0x20] sm:$0xff]  ;;  %v1340_v9 = vld [vmem:[%s2182_s26 + $0x18] sm:$0xff]  ;;  %v1339_v11 = vld [vmem:[%s2182_s26 + $0x10] sm:$0xff] }
  0x85   : > { %v1353_v8 = vld [vmem:[%s2185_s29 + $0x20] sm:$0xff]  ;;  %v1352_v10 = vld [vmem:[%s2185_s29 + $0x18] sm:$0xff]  ;;  %v1351_v12 = vld [vmem:[%s2185_s29 + $0x10] sm:$0xff] }
  0x86   : > { %v1338_v13 = vld [vmem:[%s2182_s26 + $0x8] sm:$0xff]  ;;  %v1337_v15 = vld [vmem:[%s2182_s26] sm:$0xff]  ;;  %v1334_v30 = vld [vmem:[%s2202_s13 + $0x14] sm:$0xf0] }
  0x87   : > { %648 = vmatpush.bf16.msra.mxu0 %v1343_v3  ;;  %1359 = vmatpush.bf16.msra.mxu2 %v1343_v3  ;;  %v1350_v14 = vld [vmem:[%s2185_s29 + $0x8] sm:$0xff]  ;;  %v1228_v16 = vld [vmem:[%s2202_s13] sm:$0xf]  ;;  %v1284_v21 = vld [vmem:[%s2202_s13 + $0x24] sm:$0xf] }
  0x88   : > { %1367 = vmatpush.bf16.msra.mxu3 %v1355_v4  ;;  %785 = vmatpush.bf16.msra.mxu1 %v1355_v4  ;;  %v1333_v17 = vld [vmem:[%s2202_s13 + $0x4] sm:$0xf0]  ;;  %v1236_v18 = vld [vmem:[%s2202_s13 + $0x20] sm:$0xf]  ;;  %v1347_v22 = vld [vmem:[%s2202_s13 + $0x28] sm:$0xf0] }
  0x89   : > { %v1335_v19 = vld [vmem:[%s2202_s13 + $0x24] sm:$0xf0]  ;;  %v1276_v23 = vld [vmem:[%s2202_s13 + $0x4] sm:$0xf]  ;;  %v1345_v24 = vld [vmem:[%s2202_s13 + $0x8] sm:$0xf0]  ;;  %v1229_v25 = vor.u32 %v1333_v17, %v1228_v16  ;;  %v1285_v27 = vor.u32 %v1347_v22, %v1284_v21 }
  0x8a   : > { %v1349_v20 = vld [vmem:[%s2185_s29] sm:$0xff]  ;;  %v1237_v26 = vor.u32 %v1335_v19, %v1236_v18  ;;  %v1277_v28 = vor.u32 %v1345_v24, %v1276_v23  ;;  %v1232_v29 = vld [vmem:[%s2202_s13 + $0x10] sm:$0xf]  ;;  %v1336_v32 = vld [vmem:[%s2202_s13 + $0x34] sm:$0xf0] }
  0x8b   : > { %649 = vmatpush.bf16.msra.mxu0 %v1342_v5  ;;  %1360 = vmatpush.bf16.msra.mxu2 %v1342_v5  ;;  %v1240_v31 = vld [vmem:[%s2202_s13 + $0x30] sm:$0xf]  ;;  %v1288_v33 = vld [vmem:[%s2202_s13 + $0x34] sm:$0xf]  ;;  %v1348_v34 = vld [vmem:[%s2202_s13 + $0x38] sm:$0xf0]  ;;  %v1233_v37 = vor.u32 %v1334_v30, %v1232_v29 }
  0x8c   : > { %1368 = vmatpush.bf16.msra.mxu3 %v1354_v6  ;;  %786 = vmatpush.bf16.msra.mxu1 %v1354_v6  ;;  %v1280_v35 = vld [vmem:[%s2202_s13 + $0x14] sm:$0xf]  ;;  %v1346_v36 = vld [vmem:[%s2202_s13 + $0x18] sm:$0xf0]  ;;  %v1241_v38 = vor.u32 %v1336_v32, %v1240_v31  ;;  %v1289_v39 = vor.u32 %v1348_v34, %v1288_v33  ;;  %v2254_v41 = vld [vmem:[%s519_s1] ss:$0 sm:$0xff] }
  0x8d   : > { %v1281_v40 = vor.u32 %v1346_v36, %v1280_v35  ;;  %v545_v42 = vld [vmem:[%s424_s30] sm:$0x1]  ;;  %v891_v51 = vld [vmem:[#allocation2 + $0x30] sm:$0xff]  ;;  %v895_v61 = vld [vmem:[#allocation2 + $0x8] sm:$0xff] }
  0x8e   : > { %v546_v45 = vsub.f32 1.0, %v545_v42  ;;  %v537_v56 = vld [vmem:[%s2166_s7] sm:$0xff]  ;;  %v538_v17 = vld [vmem:[%s2166_s7 + $0x8] sm:$0xff]  ;;  %v893_v34 = vld [vmem:[#allocation2 + $0x18] sm:$0xff] }
  0x8f   : > { %650 = vmatpush.bf16.msra.mxu0 %v1341_v7  ;;  %1361 = vmatpush.bf16.msra.mxu2 %v1341_v7  ;;  %v2267_v58 = vld [vmem:[%s424_s30] ss:$0 sm:$0xff] }
  0x90   : > { %1369 = vmatpush.bf16.msra.mxu3 %v1353_v8  ;;  %787 = vmatpush.bf16.msra.mxu1 %v1353_v8  ;;  %v2259_v46 = vperm.slane %v546_v45, 0  ;;  %v2275_v63 = vld [vmem:[%s522_s4] ss:$0 sm:$0xff]  ;;  %v816_v7 = vmul.f32 %v2267_v58, %v537_v56  ;;  %v817_v32 = vmul.f32 %v2267_v58, %v538_v17 }
  0x91   : > { %v892_v5 = vld [vmem:[#allocation2] sm:$0xff] }
  0x92   : > { %v827_v0 = vmul.f32 %v2259_v46, %v537_v56  ;;  %v896_v23 = vld [vmem:[#allocation2 + $0x20] sm:$0xff]  ;;  %v897_v56 = vld [vmem:[#allocation2 + $0x28] sm:$0xff] }
  0x93   : > { %651 = vmatpush.bf16.msra.mxu0 %v1340_v9  ;;  %1362 = vmatpush.bf16.msra.mxu2 %v1340_v9 }
  0x94   : > { %1370 = vmatpush.bf16.msra.mxu3 %v1352_v10  ;;  %788 = vmatpush.bf16.msra.mxu1 %v1352_v10 }
  0x97   : > { %652 = vmatpush.bf16.msra.mxu0 %v1339_v11  ;;  %1363 = vmatpush.bf16.msra.mxu2 %v1339_v11 }
  0x98   : > { %1371 = vmatpush.bf16.msra.mxu3 %v1351_v12  ;;  %789 = vmatpush.bf16.msra.mxu1 %v1351_v12  ;;  %v541_v12 = vld [vmem:[%s2166_s7 + $0x20] sm:$0xff] }
  0x99   : > { %v831_v19 = vmul.f32 %v2259_v46, %v541_v12 }
  0x9b   : > { %653 = vmatpush.bf16.msra.mxu0 %v1338_v13  ;;  %1364 = vmatpush.bf16.msra.mxu2 %v1338_v13 }
  0x9c   : > { %1372 = vmatpush.bf16.msra.mxu3 %v1350_v14  ;;  %790 = vmatpush.bf16.msra.mxu1 %v1350_v14 }
  0x9f   : > { %654 = vmatpush.bf16.msra.mxu0 %v1337_v15  ;;  %1365 = vmatpush.bf16.msra.mxu2 %v1337_v15 }
  0xa0   : > { %1373 = vmatpush.bf16.msra.mxu3 %v1349_v20  ;;  %791 = vmatpush.bf16.msra.mxu1 %v1349_v20 }
  0xa2   : > { %655 = vmatmul.bf16.vlgmr.msra.gmra.mxu0 %v1229_v25  ;;  %665 = vmatmul.bf16.vlgmr.msra.gmra.mxu2 %v1237_v26  ;;  %v820_v25 = vmul.f32 %v2267_v58, %v541_v12 }
  0xa3   : > { %802 = vmatmul.bf16.vlgmr.msra.gmra.mxu3 %v1285_v27  ;;  %792 = vmatmul.bf16.vlgmr.msra.gmra.mxu1 %v1277_v28  ;;  %v828_v27 = vmul.f32 %v2259_v46, %v538_v17 }
  0xb2   : > { %660 = vmatmul.bf16.gmra.mxu0 %v1233_v37  ;;  %670 = vmatmul.bf16.gmra.mxu2 %v1241_v38 }
  0xb3   : > { %807 = vmatmul.bf16.gmra.mxu3 %v1289_v39  ;;  %797 = vmatmul.bf16.gmra.mxu1 %v1281_v40 }
 0x11f   : > { %v656_v43 = vpop.f32.mrf.mxu0 }
 0x120   : > { %v657_v44 = vadd.f32 %v2254_v41, %v656_v43  ;;  %v793_v57 = vpop.f32.mrf.mxu1  ;;  %v542_v43 = vld [vmem:[%s2166_s7 + $0x28] sm:$0xff] }
 0x121   : > { %v794_v14 = vadd.f32 %v2275_v63, %v793_v57 }
 0x122   : > { %1535 = vtanh.f32 %v657_v44 }
 0x125   : > { %v666_v47 = vpop.f32.mrf.mxu2 }
 0x126   : > { %v667_v48 = vadd.f32 %v2254_v41, %v666_v47  ;;  %v803_v13 = vpop.f32.mrf.mxu3 }
 0x127   : > { %v658_v49 = vpop.f32.mrf.mxu0  ;;  %v804_v35 = vadd.f32 %v2275_v63, %v803_v13 }
 0x128   : > { %v1536_v50 = vpop.eup %1535  ;;  %1537 = vtanh.f32 %v667_v48  ;;  %v659_v52 = vadd.f32 %v2254_v41, %v658_v49  ;;  %v795_v21 = vpop.f32.mrf.mxu1  ;;  %v539_v49 = vld [vmem:[%s2166_s7 + $0x10] sm:$0xff] }
 0x129   : > { %v835_v53 = vmul.f32 1.442695, %v1536_v50  ;;  %v883_v54 = vmul.f32 %v1536_v50, %v2259_v46 }
 0x12a   : > { %1539 = vtanh.f32 %v659_v52 }
 0x12b   : > { %1541 = vpow2.f32 %v835_v53  ;;  %v899_v55 = vadd.f32 %v891_v51, %v883_v54  ;;  %v796_v51 = vadd.f32 %v2275_v63, %v795_v21  ;;  %v832_v53 = vmul.f32 %v2259_v46, %v542_v43 }
 0x12d   : > { %907 = vst [vmem:[#allocation2 + $0x30] sm:$0xff] %v899_v55  ;;  %v668_v59 = vpop.f32.mrf.mxu2 }
 0x12e   : > { %v1538_v60 = vpop.eup %1537  ;;  %v669_v62 = vadd.f32 %v2254_v41, %v668_v59  ;;  %v805_v48 = vpop.f32.mrf.mxu3  ;;  %v821_v59 = vmul.f32 %v2267_v58, %v542_v43 }
 0x12f   : > { %v843_v1 = vmul.f32 1.442695, %v1538_v60  ;;  %v887_v2 = vmul.f32 %v1538_v60, %v2259_v46  ;;  %v661_v3 = vpop.f32.mrf.mxu0 }
 0x130   : > { %v1540_v4 = vpop.eup %1539  ;;  %1543 = vtanh.f32 %v669_v62  ;;  %v662_v6 = vadd.f32 %v2254_v41, %v661_v3 }
 0x131   : > { %v1542_v8 = vpop.eup %1541  ;;  %1545 = vpow2.f32 %v843_v1  ;;  %v903_v9 = vadd.f32 %v895_v61, %v887_v2  ;;  %v837_v10 = vmul.f32 1.442695, %v1540_v4  ;;  %v884_v11 = vmul.f32 %v1540_v4, %v2259_v46  ;;  %v798_v2 = vpop.f32.mrf.mxu1  ;;  %v894_v4 = vld [vmem:[#allocation2 + $0x10] sm:$0xff] }
 0x132   : > { %1547 = vtanh.f32 %v662_v6  ;;  %v851_v15 = vmul.f32 %v1542_v8, %v827_v0  ;;  %v829_v61 = vmul.f32 %v2259_v46, %v539_v49  ;;  %v818_v6 = vmul.f32 %v2267_v58, %v539_v49 }
 0x133   : > { %911 = vst [vmem:[#allocation2 + $0x8] sm:$0xff] %v903_v9  ;;  %1549 = vpow2.f32 %v837_v10  ;;  %v900_v16 = vadd.f32 %v892_v5, %v884_v11  ;;  %v543_v10 = vld [vmem:[%s2166_s7 + $0x30] sm:$0xff]  ;;  %v806_v11 = vadd.f32 %v2275_v63, %v805_v48  ;;  %v799_v13 = vadd.f32 %v2275_v63, %v798_v2 }
 0x134   : > { %v859_v18 = vadd.f32 %v851_v15, %v816_v7 }
 0x135   : > { %908 = vst [vmem:[#allocation2] sm:$0xff] %v900_v16  ;;  %v671_v20 = vpop.f32.mrf.mxu2  ;;  %v540_v16 = vld [vmem:[%s2166_s7 + $0x18] sm:$0xff] }
 0x136   : > { %v1544_v22 = vpop.eup %1543  ;;  %v867_v24 = vadd.f32 %v859_v18, %v794_v14  ;;  %v672_v26 = vadd.f32 %v2254_v41, %v671_v20  ;;  %v808_v20 = vpop.f32.mrf.mxu3 }
 0x137   : > { %v1546_v28 = vpop.eup %1545  ;;  %v845_v29 = vmul.f32 1.442695, %v1544_v22  ;;  %v888_v30 = vmul.f32 %v1544_v22, %v2259_v46  ;;  %v663_v31 = vpop.f32.mrf.mxu0  ;;  %v898_v22 = vld [vmem:[#allocation2 + $0x38] sm:$0xff] }
 0x138   : > { %v1548_v33 = vpop.eup %1547  ;;  %875 = vst [vmem:[%s2212_s19] sm:$0xff] %v867_v24  ;;  %v855_v36 = vmul.f32 %v1546_v28, %v831_v19  ;;  %1551 = vtanh.f32 %v672_v26  ;;  %v664_v37 = vadd.f32 %v2254_v41, %v663_v31  ;;  %v833_v19 = vmul.f32 %v2259_v46, %v543_v10 }
 0x139   : > { %v1550_v38 = vpop.eup %1549  ;;  %1553 = vpow2.f32 %v845_v29  ;;  %v904_v39 = vadd.f32 %v896_v23, %v888_v30  ;;  %v839_v40 = vmul.f32 1.442695, %v1548_v33  ;;  %v885_v42 = vmul.f32 %v1548_v33, %v2259_v46 }
 0x13a   : > { %v863_v44 = vadd.f32 %v855_v36, %v820_v25  ;;  %1555 = vtanh.f32 %v664_v37  ;;  %v852_v45 = vmul.f32 %v1550_v38, %v828_v27  ;;  %v822_v24 = vmul.f32 %v2267_v58, %v543_v10 }
 0x13b   : > { %912 = vst [vmem:[#allocation2 + $0x20] sm:$0xff] %v904_v39  ;;  %1557 = vpow2.f32 %v839_v40  ;;  %v901_v47 = vadd.f32 %v893_v34, %v885_v42  ;;  %v830_v25 = vmul.f32 %v2259_v46, %v540_v16  ;;  %v809_v29 = vadd.f32 %v2275_v63, %v808_v20  ;;  %v800_v34 = vpop.f32.mrf.mxu1 }
 0x13c   : > { %v871_v50 = vadd.f32 %v863_v44, %v804_v35  ;;  %v860_v52 = vadd.f32 %v852_v45, %v817_v32  ;;  %v819_v31 = vmul.f32 %v2267_v58, %v540_v16  ;;  %v544_v35 = vld [vmem:[%s2166_s7 + $0x38] sm:$0xff]  ;;  %v801_v39 = vadd.f32 %v2275_v63, %v800_v34  ;;  %s2516_s7 = sld [smem:[#allocation26_spill]] }
 0x13d   : > { %909 = vst [vmem:[#allocation2 + $0x18] sm:$0xff] %v901_v47  ;;  %v673_v54 = vpop.f32.mrf.mxu2  ;;  %v834_v42 = vmul.f32 %v2259_v46, %v544_v35  ;;  %v823_v44 = vmul.f32 %v2267_v58, %v544_v35 }
 0x13e   : > { %v1552_v55 = vpop.eup %1551  ;;  %879 = vst [vmem:[%s2212_s19 + $0x20] sm:$0xff] %v871_v50  ;;  %v868_v57 = vadd.f32 %v860_v52, %v796_v51  ;;  %v674_v60 = vadd.f32 %v2254_v41, %v673_v54  ;;  %v810_v47 = vpop.f32.mrf.mxu3 }
 0x13f   : > { %v1554_v62 = vpop.eup %1553  ;;  %v847_v0 = vmul.f32 1.442695, %v1552_v55  ;;  %v889_v1 = vmul.f32 %v1552_v55, %v2259_v46  ;;  %v811_v49 = vadd.f32 %v2275_v63, %v810_v47 }
 0x140   : > { %v1556_v3 = vpop.eup %1555  ;;  %876 = vst [vmem:[%s2212_s19 + $0x8] sm:$0xff] %v868_v57  ;;  %v856_v5 = vmul.f32 %v1554_v62, %v832_v53  ;;  %1559 = vtanh.f32 %v674_v60 }
 0x141   : > { %v1558_v7 = vpop.eup %1557  ;;  %1561 = vpow2.f32 %v847_v0  ;;  %v905_v8 = vadd.f32 %v897_v56, %v889_v1  ;;  %v841_v41 = vmul.f32 1.442695, %v1556_v3  ;;  %v886_v9 = vmul.f32 %v1556_v3, %v2259_v46 }
 0x142   : > { %v864_v12 = vadd.f32 %v856_v5, %v821_v59  ;;  %v853_v14 = vmul.f32 %v1558_v7, %v829_v61  ;;  %p1322_p1 = scmp.ne.s32.totalorder %s2516_s7, 2 }
 0x143   : > { %913 = vst [vmem:[#allocation2 + $0x28] sm:$0xff] %v905_v8  ;;  %1563 = vpow2.f32 %v841_v41  ;;  %v902_v15 = vadd.f32 %v894_v4, %v886_v9 }
 0x144   : > { %v872_v17 = vadd.f32 %v864_v12, %v806_v11  ;;  %v861_v18 = vadd.f32 %v853_v14, %v818_v6 }
 0x145   : > { %910 = vst [vmem:[#allocation2 + $0x10] sm:$0xff] %v902_v15 }
 0x146   : > { %v1560_v21 = vpop.eup %1559  ;;  %880 = vst [vmem:[%s2212_s19 + $0x28] sm:$0xff] %v872_v17  ;;  %v869_v23 = vadd.f32 %v861_v18, %v799_v13 }
 0x147   : > { %v1562_v26 = vpop.eup %1561  ;;  %v849_v27 = vmul.f32 1.442695, %v1560_v21  ;;  %v890_v28 = vmul.f32 %v1560_v21, %v2259_v46 }
 0x148   : > { %877 = vst [vmem:[%s2212_s19 + $0x10] sm:$0xff] %v869_v23  ;;  %v857_v30 = vmul.f32 %v1562_v26, %v833_v19 }
 0x149   : > { %v1564_v32 = vpop.eup %1563  ;;  %1565 = vpow2.f32 %v849_v27  ;;  %v906_v33 = vadd.f32 %v898_v22, %v890_v28 }
 0x14a   : > { %v865_v36 = vadd.f32 %v857_v30, %v822_v24  ;;  %v854_v37 = vmul.f32 %v1564_v32, %v830_v25 }
 0x14b   : > { %914 = vst [vmem:[#allocation2 + $0x38] sm:$0xff] %v906_v33 }
 0x14c   : > { %v873_v38 = vadd.f32 %v865_v36, %v809_v29  ;;  %v862_v40 = vadd.f32 %v854_v37, %v819_v31 }
 0x14e   : > { %881 = vst [vmem:[%s2212_s19 + $0x30] sm:$0xff] %v873_v38  ;;  %v870_v43 = vadd.f32 %v862_v40, %v801_v39 }
 0x14f   : > { %v1566_v45 = vpop.eup %1565 }
 0x150   : > { %878 = vst [vmem:[%s2212_s19 + $0x18] sm:$0xff] %v870_v43  ;;  %v858_v48 = vmul.f32 %v1566_v45, %v834_v42 }
 0x152   : > { %v866_v50 = vadd.f32 %v858_v48, %v823_v44  ;;  %918 = sbr.rel (%p1322_p1) target bundleno = 478 (0x1de), region = 72 }
 0x154   : > { %v874_v51 = vadd.f32 %v866_v50, %v811_v49 }
 0x156   : > { %882 = vst [vmem:[%s2212_s19 + $0x38] sm:$0xff] %v874_v51 }
 0x157   : > { %v921_v52 = vld [vmem:[#allocation2 + $0x18] sm:$0xff]  ;;  %v919_v53 = vld [vmem:[#allocation2 + $0x30] sm:$0xff]  ;;  %v923_v54 = vld [vmem:[#allocation2 + $0x8] sm:$0xff] }
 0x158   : > { %931 = vadd.xlane.f32.xlu1 %v921_v52  ;;  %927 = vadd.xlane.f32.xlu0 %v919_v53  ;;  %v922_v46 = vld [vmem:[#allocation2 + $0x10] sm:$0xff]  ;;  %v920_v58 = vld [vmem:[#allocation2] sm:$0xff]  ;;  %v926_v63 = vld [vmem:[#allocation2 + $0x38] sm:$0xff] }
 0x159   : > { %935 = vadd.xlane.f32.xlu2 %v923_v54  ;;  %v924_v55 = vld [vmem:[#allocation2 + $0x20] sm:$0xff]  ;;  %v925_v56 = vld [vmem:[#allocation2 + $0x28] sm:$0xff] }
 0x160   : > { %933 = vadd.xlane.f32.xlu1 %v922_v46  ;;  %929 = vadd.xlane.f32.xlu0 %v920_v58 }
 0x161   : > { %937 = vadd.xlane.f32.xlu2 %v924_v55 }
 0x168   : > { %941 = vadd.xlane.f32.xlu1 %v926_v63  ;;  %939 = vadd.xlane.f32.xlu0 %v925_v56 }
 0x1cb   : > { %v932_v57 = vpop.xlane.xlu1 %931  ;;  %v928_v59 = vpop.xlane.xlu0 %927 }
 0x1cc   : > { %945 = vst [vmem:[%s2214_s21 + $0x10] sm:$0xff] %v932_v57  ;;  %v936_v60 = vpop.xlane.xlu2 %935 }
 0x1cd   : > { %943 = vst [vmem:[%s2214_s21] sm:$0xff] %v928_v59 }
 0x1ce   : > { %947 = vst [vmem:[%s2214_s21 + $0x20] sm:$0xff] %v936_v60 }
 0x1d3   : > { %v934_v61 = vpop.xlane.xlu1 %933  ;;  %v930_v62 = vpop.xlane.xlu0 %929 }
 0x1d4   : > { %946 = vst [vmem:[%s2214_s21 + $0x18] sm:$0xff] %v934_v61  ;;  %v938_v0 = vpop.xlane.xlu2 %937 }
 0x1d5   : > { %944 = vst [vmem:[%s2214_s21 + $0x8] sm:$0xff] %v930_v62 }
 0x1d6   : > { %948 = vst [vmem:[%s2214_s21 + $0x28] sm:$0xff] %v938_v0 }
 0x1db   : > { %v942_v1 = vpop.xlane.xlu1 %941  ;;  %v940_v2 = vpop.xlane.xlu0 %939 }
 0x1dc   : > { %950 = vst [vmem:[%s2214_s21 + $0x38] sm:$0xff] %v942_v1 }
 0x1dd   : > { %949 = vst [vmem:[%s2214_s21 + $0x30] sm:$0xff] %v940_v2 }
 0x1de PF: > { %s2517_s24 = sld [smem:[#allocation27_spill]]  ;;  %s971_s10 = sshll.u32 %s2212_s19, 4  ;;  %s972_s10 = int_to_ptr.vmem [resolvable:$true] %s971_s10 }
 0x1df   : > { %s2518_s30 = sld [smem:[#allocation26_spill]]  ;;  %s952_s25 = scalar_lea.sflag [#allocation5], %s2162_s2 }
 0x1e0   : > { %s2520_s18 = sld [smem:[#allocation45_spill]] }
 0x1e4   : > { %s1375_s27 = smul.u32 24, %s2517_s24  ;;  %s1357_s8 = sshll.u32 %s2517_s24, 6 }
 0x1e6   : > { %s968_s6 = sadd.s32 %s2518_s30, %s1375_s27  ;;  %s2521_s0 = smov %s2520_s18 }
 0x1e7   : > { %s1327_s28 = sshll.u32 %s968_s6, 3  ;;  %s1707_s29 = scalar_lea.hbm %s2521_s0, 576 }
 0x1e8   : > { %s970_s1 = scalar_lea.hbm %s2520_s18, %s1327_s28 }
 0x1e9   : > { %s973_s9 = sshll.u32 %s970_s1, 4  ;;  %s974_s9 = int_to_ptr.hbm [resolvable:$true] %s973_s9 }
 0x1ea   : > { %s1701_s4 = sshra.s32 %s974_s9, 4  ;;  %s1702_s4 = int_to_ptr.hbm [resolvable:$true] %s1701_s4 }
 0x1eb   : > { %s1703_s17 = scalar_lea.hbm %s1702_s4, 64  ;;  %p1708_p12 = scmp.lt.s32.totalorder %s1702_s4, %s2521_s0 }
 0x1ec   : > { %p1704_p7 = scmp.ne.s32.totalorder %s1702_s4, %s1703_s17  ;;  %p1709_p0 = scmp.lt.s32.totalorder %s1707_s29, %s1703_s17 }
 0x1ee   : > { %p1705_p3 = pnand %p1704_p7, %p2067_p2  ;;  %p1710_p4 = por %p1709_p0, %p1708_p12 }
 0x1f0   : > { %p1706_p5 = pneg %p1705_p3 }
 0x1f2   : > { %p1711_p8 = pnand %p1710_p4, %p1706_p5 }
 0x1f4   : > { %1714 = shalt.err (!%p1711_p8)
}
 0x1f5   : > { %s1882_s2 = smov 128   ;;  %s1883_s24 = smov 384  }
 0x1f6   : > { %s1884_s30 = smov 8   ;;  %s2524_s28 = sld [smem:[#allocation46_spill]] }
 0x1f7   : > { %1384 = dma.vmem_to_hbm [thread:$0]  (%p2067_p2), %s972_s10, 1024, %s974_s9, %s952_s25, %s1882_s2, %s1883_s24, %s1884_s30  }
 0x1f8   : > { %s988_s15 = sshll.u32 %s2214_s21, 4  ;;  %s957_s4 = scalar_lea.sflag [#allocation13], %s506_s22  ;;  %s989_s15 = int_to_ptr.vmem [resolvable:$true] %s988_s15 }
 0x1fc   : > { %s2525_s1 = smov %s2524_s28  ;;  %s987_s13 = scalar_lea.hbm %s2524_s28, %s1357_s8 }
 0x1fd   : > { %s990_s18 = sshll.u32 %s987_s13, 4  ;;  %s1735_s10 = scalar_lea.hbm %s2525_s1, 192  ;;  %s991_s18 = int_to_ptr.hbm [resolvable:$true] %s990_s18 }
 0x1fe   : > { %s1729_s17 = sshra.s32 %s991_s18, 4  ;;  %s1730_s17 = int_to_ptr.hbm [resolvable:$true] %s1729_s17 }
 0x1ff   : > { %s1731_s26 = scalar_lea.hbm %s1730_s17, 64  ;;  %p1736_p2 = scmp.lt.s32.totalorder %s1730_s17, %s2525_s1 }
 0x200   : > { %p1732_p6 = scmp.ne.s32.totalorder %s1730_s17, %s1731_s26  ;;  %p1737_p7 = scmp.lt.s32.totalorder %s1735_s10, %s1731_s26 }
 0x202   : > { %p1733_p11 = pnand %p1732_p6, %p2084_p10  ;;  %p1738_p3 = por %p1737_p7, %p1736_p2 }
 0x204   : > { %p1734_p1 = pneg %p1733_p11 }
 0x206   : > { %p1739_p5 = pnand %p1738_p3, %p1734_p1 }
 0x208   : > { %1742 = shalt.err (!%p1739_p5)
}
 0x209   : > { %1385 = dma.vmem_to_hbm [thread:$0]  (%p2084_p10), %s989_s15, 1024, %s991_s18, %s957_s4, %s1882_s2, %s1882_s2, %s1884_s30  }
 0x20a PF: > { %s2526_s22 = sld [smem:[#allocation29_spill]] }
 0x20b   : > { %s2527_s21 = sld [smem:[#allocation24_spill]] }
 0x210   : > { %p1409_p12 = scmp.ge.s32.totalorder %s2526_s22, 2 }
 0x211   : > { %s1005_s29 = sand.u32 1, %s2527_s21  }
 0x212   : > { %p1402_p0 = pnand %p1409_p12, %p2075_p9  ;;  %s1006_s20 = scalar_lea.sflag [#allocation5], %s1005_s29 }
 0x214   : > { %p1403_p4 = pneg %p1402_p0 }
 0x216   : > { %1812 = dma.done.wait (%p1403_p4), %s1006_s20, 1024  }
 0x217   : > { %1814 = vsyncadd (%p1403_p4), %s1006_s20, 4294966272  ;;  %s2529_s23 = sld [smem:[#allocation19_spill]]  ;;  %p1405_p8 = pnand %p1409_p12, %p2091_p13 }
 0x219   : > { %p1406_p6 = pneg %p1405_p8 }
 0x21d   : > { %s1015_s24 = sand.u32 1, %s2529_s23  }
 0x21e   : > { %s1016_s7 = scalar_lea.sflag [#allocation13], %s1015_s24 }
 0x21f   : > { %1816 = dma.done.wait (%p1406_p6), %s1016_s7, 1024  }
 0x220   : > { %1818 = vsyncadd (%p1406_p6), %s1016_s7, 4294966272  ;;  %s34_s18 = sadd.s32 1, %s2526_s22   ;;  %s2532_s27 = sld [smem:[#allocation20_spill]] }
 0x221   : > { %p2378_p10 = scmp.ge.s32.totalorder %s34_s18, 11   ;;  %s2533_s28 = sld [smem:[#allocation21_spill]] }
 0x222   : > { %s2534_s29 = sld [smem:[#allocation37_spill]]  ;;  %s2543_s11 = smov %s1849_s12 }
 0x223   : > { %s2535_s30 = sld [smem:[#allocation22_spill]]  ;;  %s2545_s14 = smov %s1865_s16 }
 0x224   : > { %s2536_s9 = sld [smem:[#allocation23_spill]] }
 0x225   : > { %s2537_s10 = sld [smem:[#allocation32_spill]] }
 0x226   : > { %s2538_s6 = sld [smem:[#allocation25_spill]] }
 0x227   : > { %s2539_s13 = sld [smem:[#allocation33_spill]] }
 0x228   : > { %s2540_s15 = sld [smem:[#allocation28_spill]] }
 0x229   : > { %s2541_s4 = sld [smem:[#allocation30_spill]] }
 0x22a   : > { %s2542_s17 = sld [smem:[#allocation31_spill]] }
 0x22b   :  { %33 = sbr.rel (!%p2378_p10) target bundleno = 24 (0x18), region = 164 }
 0x22c   : > { %s2544_s12 = smov %s2538_s6 }
 0x22f   : > { %s2546_s16 = smov %s2541_s4 }
 0x230   :  { %1022 = vsyncpa [#allocation4], 1 }
 0x231   :  { %1024 = vsyncpa [#allocation4 + $0x1], 1 }
 0x232   :  { %1025 = vsyncpa [#allocation7], 1 }
 0x233   :  { %1027 = vsyncpa [#allocation7 + $0x1], 1 }
 0x234   :  { %1028 = vsyncpa [#allocation10], 1 }
 0x235   :  { %1030 = vsyncpa [#allocation10 + $0x1], 1 }
 0x236   :  { %1031 = vsyncpa [#allocation5], 1 }
 0x237   :  { %1033 = vsyncpa [#allocation5 + $0x1], 1 }
 0x238   :  { %1034 = vsyncpa [#allocation13], 1 }
 0x239   :  { %1036 = vsyncpa [#allocation13 + $0x1], 1 }

</bundles_post_ra>
